<compile_context>
chip_gen: v5e
topology: v5e:2x2
jax: 0.10.0
libtpu: 0.0.40
codegen_flags: <defaults>
</compile_context>

<pallas_src>
import functools

import jax
import jax.numpy as jnp
from jax.experimental import pallas as pl
from jax.experimental.pallas import tpu as pltpu

# Small synthetic ViT config (DINOv2-style: 14x14 patches, pre-LN blocks,
# LayerScale, GELU MLP, final LayerNorm, return patch tokens only).
PATCH = 14
EMBED = 64
HEADS = 2
DEPTH = 2
MLP = 256
DH = EMBED // HEADS
EPS = 1e-6                                   # DINOv2 uses LayerNorm(eps=1e-6)
OUT_LANES = max(128, ((EMBED + 127) // 128) * 128)   # lane-dense output slab


# ------------------------------ fused kernel ------------------------------- #

def _layernorm(x, g, b):
    mu = jnp.mean(x, axis=-1, keepdims=True)
    var = jnp.mean(jnp.square(x - mu), axis=-1, keepdims=True)
    return (x - mu) * jax.lax.rsqrt(var + EPS) * g + b


def _dino_fused_kernel(
        patches_ref, patch_w_ref, base_ref,
        ln1_g, ln1_b, wq, wk, wv, bq, bk, bv, wo, bo, ls1,
        ln2_g, ln2_b, w1, b1, w2, b2, ls2,
        norm_g, norm_b,
        o_ref, *, n_valid):
    f32, bf16 = jnp.float32, jnp.bfloat16
    BNp = patches_ref.shape[0]
    Np, C = base_ref.shape
    B = BNp // Np

    # ---- patch embed + token assembly as one matmul + one add (in vregs) ----
    # cls/pad rows of patches_ref are zero, so the dot contributes nothing
    # there; base_ref carries cls_token+pos[0] for the cls slot,
    # patch_bias+pos[1:] for patch slots and zeros for pad slots.
    tok = jnp.dot(patches_ref[...], patch_w_ref[...], preferred_element_type=f32)
    x = (tok.reshape(B, Np, C) + base_ref[...]).reshape(BNp, C)        # (B*Np, C)

    # Padded KEY slots (token index >= n_valid) are masked out of the softmax.
    # Padded QUERY/pad rows are all-zero here (LayerNorm on them degenerates to
    # its bias via rsqrt(eps)); they carry finite junk through the blocks and
    # are sliced off in the wrapper -- never reduce over those rows.
    kmask = jax.lax.broadcasted_iota(jnp.int32, (1, 1, Np), 2) < n_valid

    for d in range(DEPTH):                    # DEPTH=2 -> Python unroll is fine
        # ------------- attention: x = x + ls1 * Attn(LN1(x)) ------------- #
        xn = _layernorm(x, ln1_g[d], ln1_b[d]).astype(bf16)
        attn = bo[d]                           # (1, C) f32, broadcasts over rows
        # Per-head weights are pre-split in the wrapper: each head is pure 2-D
        # MXU dots, no lane slicing / concat relayouts in the kernel.
        # TODO(synk): for real DINOv2 head counts replace this unroll with a
        # head-batched dot_general plus flash-style key tiling.
        for hh in range(HEADS):
            # 1/sqrt(Dh) is folded into wq/bq in the wrapper.
            qh = (jnp.dot(xn, wq[d, hh], preferred_element_type=f32)
                  + bq[d, hh]).reshape(B, Np, DH)
            kh = (jnp.dot(xn, wk[d, hh], preferred_element_type=f32)
                  + bk[d, hh]).reshape(B, Np, DH)
            vh = (jnp.dot(xn, wv[d, hh], preferred_element_type=f32)
                  + bv[d, hh]).reshape(B, Np, DH)
            s = jnp.einsum('bnd,bmd->bnm', qh.astype(bf16), kh.astype(bf16),
                           preferred_element_type=f32)                # (B,Np,Np)
            s = jnp.where(kmask, s, -1e30)
            s = s - jnp.max(s, axis=-1, keepdims=True)
            p = jnp.exp(s)
            p = p * pl.reciprocal(jnp.sum(p, axis=-1, keepdims=True), approx=True)
            oh = jnp.einsum('bnm,bmd->bnd', p.astype(bf16), vh.astype(bf16),
                            preferred_element_type=f32)               # (B,Np,Dh)
            # Head merge == block matmul with the per-head slice of wproj.
            attn = attn + jnp.dot(oh.reshape(BNp, DH).astype(bf16), wo[d, hh],
                                  preferred_element_type=f32)
        x = x + ls1[d] * attn

        # ------------------ MLP: x = x + ls2 * MLP(LN2(x)) ---------------- #
        xn2 = _layernorm(x, ln2_g[d], ln2_b[d])
        # TODO(synk): PyTorch nn.GELU() defaults to the exact erf form; tanh
        # approximation (~1e-3 diff) is used to stay on guaranteed lowerings.
        h1 = jax.nn.gelu(jnp.dot(xn2.astype(bf16), w1[d],
                                 preferred_element_type=f32) + b1[d],
                         approximate=True)
        h2 = jnp.dot(h1.astype(bf16), w2[d], preferred_element_type=f32) + b2[d]
        x = x + ls2[d] * h2

    # ---- final LayerNorm; lane-pad to OUT_LANES -> single unmasked store ----
    xf = _layernorm(x, norm_g[...], norm_b[...])                       # (B*Np, C)
    if OUT_LANES > C:
        xf = jnp.concatenate(
            [xf, jnp.zeros((BNp, OUT_LANES - C), f32)], axis=-1)
    o_ref[...] = xf


# --------------------------- one-time weight packing ------------------------ #

def pack_params(params):
    """Stack per-block weights along DEPTH, split attention weights per head,
    fold 1/sqrt(Dh) into Q, and pre-cast matmul operands to bf16.  Called ONCE
    outside the jitted forward so no per-step HBM repacking happens."""
    bf16 = jnp.bfloat16
    scale = DH ** -0.5

    def stack(key):
        return jnp.stack([blk[key] for blk in params['blocks']], axis=0)

    wqkv = stack('wqkv')                       # (D, C, 3C)
    bqkv = stack('bqkv')                       # (D, 1, 3C)

    def split_heads(arr, off, scl=1.0):        # lane-split once, on the host side
        return jnp.stack([arr[..., off + h * DH: off + (h + 1) * DH] * scl
                          for h in range(HEADS)], axis=1)

    wproj = stack('wproj')                     # (D, C, C)
    wo = jnp.stack([wproj[:, h * DH:(h + 1) * DH, :] for h in range(HEADS)],
                   axis=1).astype(bf16)        # (D, H, Dh, C)

    return dict(
        patch_w=params['patch_w'].astype(bf16),
        patch_b=params['patch_b'],
        cls_token=params['cls_token'],
        pos_embed=params['pos_embed'],
        wq=split_heads(wqkv, 0, scale).astype(bf16),       # (D, H, C, Dh)
        wk=split_heads(wqkv, EMBED).astype(bf16),
        wv=split_heads(wqkv, 2 * EMBED).astype(bf16),
        bq=split_heads(bqkv, 0, scale),                    # (D, H, 1, Dh)
        bk=split_heads(bqkv, EMBED),
        bv=split_heads(bqkv, 2 * EMBED),
        wo=wo, bo=stack('bproj'),
        ln1_g=stack('ln1_g'), ln1_b=stack('ln1_b'), ls1=stack('ls1'),
        ln2_g=stack('ln2_g'), ln2_b=stack('ln2_b'), ls2=stack('ls2'),
        w1=stack('w1').astype(bf16), b1=stack('b1'),
        w2=stack('w2').astype(bf16), b2=stack('b2'),
        norm_g=params['norm_g'], norm_b=params['norm_b'],
    )


# ------------------------------ model wrapper ------------------------------ #

def custom_dinov2_forward(x, packed):
    """CustomEncoder.forward -> img_encoder(x): DINOv2 forward_features,
    x_norm_patchtokens, then view(bs, h, w, c).permute(0, 3, 1, 2)."""
    B, Cin, H, W = x.shape
    h, w = H // PATCH, W // PATCH
    L = h * w
    N = L + 1
    Np = ((N + 7) // 8) * 8                  # pad token count to sublane multiple
    p_dim = Cin * PATCH * PATCH

    # Flattened stride-14 patches scattered into a (B*Np, p_dim) LHS whose
    # cls/pad token rows are zero: the in-kernel patch-embed matmul then
    # directly produces the padded token slab (no in-kernel scatter/scratch).
    # NOTE: flatten order is (Cin, ph, pw); real PyTorch conv weights
    # (C_out, 3, 14, 14) must be loaded as weight.reshape(C_out, -1).T to match.
    patches = x.reshape(B, Cin, h, PATCH, w, PATCH)
    patches = patches.transpose(0, 2, 4, 1, 3, 5).reshape(B, L, p_dim)
    patches = jnp.concatenate(
        [jnp.zeros((B, 1, p_dim), patches.dtype), patches,
         jnp.zeros((B, Np - N, p_dim), patches.dtype)], axis=1)
    patches = patches.reshape(B * Np, p_dim).astype(jnp.bfloat16)

    # Additive base per token slot: cls_token+pos[0] | patch_bias+pos[1:] | 0.
    # TODO(synk): no pos_embed interpolation for grids other than checkpoint's.
    cls_pos = packed['cls_token'][0] + packed['pos_embed'][:, 0, :]     # (1, C)
    pos_patch = packed['pos_embed'][0, 1:, :] + packed['patch_b']       # (L, C)
    base = jnp.concatenate(
        [cls_pos, pos_patch, jnp.zeros((Np - N, EMBED), jnp.float32)], axis=0)

    kernel = functools.partial(_dino_fused_kernel, n_valid=N)
    out = pl.pallas_call(
        kernel,
        out_shape=jax.ShapeDtypeStruct((B * Np, OUT_LANES), jnp.float32),
        # Single fused, gridless call: all operands (< ~1 MiB, bf16 weights)
        # stay resident in VMEM; activations never round-trip through HBM.
        # Explicit limit covers v5e's 16 MiB scoped-VMEM default when B grows.
        compiler_params=pltpu.CompilerParams(vmem_limit_bytes=32 * 1024 * 1024),
        # TODO(synk): at real DINOv2 sizes (EMBED>=768, N~1370) add a depth grid
        # axis ("arbitrary") with per-layer weight BlockSpecs, flash-style key
        # tiling for attention, and a token/batch axis marked "parallel"
        # (v7x: 2 TensorCores, only 64 MiB VMEM).
    )(patches, packed['patch_w'], base,
      packed['ln1_g'], packed['ln1_b'],
      packed['wq'], packed['wk'], packed['wv'],
      packed['bq'], packed['bk'], packed['bv'],
      packed['wo'], packed['bo'], packed['ls1'],
      packed['ln2_g'], packed['ln2_b'],
      packed['w1'], packed['b1'], packed['w2'], packed['b2'], packed['ls2'],
      packed['norm_g'], packed['norm_b'])

    # Drop cls + pad rows and the lane padding -> x_norm_patchtokens.
    patch_tok = out.reshape(B, Np, OUT_LANES)[:, 1:1 + L, :EMBED]       # (B, L, C)
    # (B, L, C) -> (B, h, w, C) -> (B, C, h, w)
    return patch_tok.reshape(B, h, w, EMBED).transpose(0, 3, 1, 2)


def init_params(key, num_patches):
    keys = iter(jax.random.split(key, 8 + DEPTH * 8))

    def rnd(shape, scale=0.02):
        return (scale * jax.random.normal(next(keys), shape)).astype(jnp.float32)

    p_dim = 3 * PATCH * PATCH
    params = {
        # conv weight (C, 3, 14, 14) flattened to (3*14*14, C)
        'patch_w': rnd((p_dim, EMBED)),
        'patch_b': rnd((1, EMBED)),
        'cls_token': rnd((1, 1, EMBED)),
        'pos_embed': rnd((1, 1 + num_patches, EMBED)),
        'norm_g': jnp.ones((1, EMBED), jnp.float32),
        'norm_b': jnp.zeros((1, EMBED), jnp.float32),
        'blocks': [],
    }
    for _ in range(DEPTH):
        params['blocks'].append({
            'ln1_g': jnp.ones((1, EMBED), jnp.float32),
            'ln1_b': jnp.zeros((1, EMBED), jnp.float32),
            'wqkv': rnd((EMBED, 3 * EMBED)),
            'bqkv': rnd((1, 3 * EMBED)),
            'wproj': rnd((EMBED, EMBED)),
            'bproj': rnd((1, EMBED)),
            'ls1': jnp.full((1, EMBED), 1e-5, jnp.float32),   # LayerScale init
            'ln2_g': jnp.ones((1, EMBED), jnp.float32),
            'ln2_b': jnp.zeros((1, EMBED), jnp.float32),
            'w1': rnd((EMBED, MLP)),
            'b1': rnd((1, MLP)),
            'w2': rnd((MLP, EMBED)),
            'b2': rnd((1, EMBED)),
            'ls2': jnp.full((1, EMBED), 1e-5, jnp.float32),
        })
    return params


if __name__ == "__main__":
    key = jax.random.PRNGKey(0)
    kx, kp = jax.random.split(key)

    B, Cin, H, W = 2, 3, 28, 28            # h = w = 2 patches of 14x14
    x = jax.random.normal(kx, (B, Cin, H, W), jnp.float32)
    params = init_params(kp, num_patches=(H // PATCH) * (W // PATCH))

    packed = pack_params(params)           # one-time packing, outside jit
    out = jax.jit(custom_dinov2_forward)(x, packed)
    out = jax.block_until_ready(out)

    assert out.shape == (B, EMBED, H // PATCH, W // PATCH), out.shape
    assert out.dtype == jnp.float32
    assert bool(jnp.all(jnp.isfinite(out)))
    print("KERNEL_OK")
</pallas_src>

<mosaic_0001>
module attributes {stable_mosaic.version = 11 : i64} {
  func.func @_dino_fused_kernel(%arg0: memref<16x588xbf16, #tpu.memory_space<vmem>>, %arg1: memref<588x64xbf16, #tpu.memory_space<vmem>>, %arg2: memref<8x64xf32, #tpu.memory_space<vmem>>, %arg3: memref<2x1x64xf32, #tpu.memory_space<vmem>>, %arg4: memref<2x1x64xf32, #tpu.memory_space<vmem>>, %arg5: memref<2x2x64x32xbf16, #tpu.memory_space<vmem>>, %arg6: memref<2x2x64x32xbf16, #tpu.memory_space<vmem>>, %arg7: memref<2x2x64x32xbf16, #tpu.memory_space<vmem>>, %arg8: memref<2x2x1x32xf32, #tpu.memory_space<vmem>>, %arg9: memref<2x2x1x32xf32, #tpu.memory_space<vmem>>, %arg10: memref<2x2x1x32xf32, #tpu.memory_space<vmem>>, %arg11: memref<2x2x32x64xbf16, #tpu.memory_space<vmem>>, %arg12: memref<2x1x64xf32, #tpu.memory_space<vmem>>, %arg13: memref<2x1x64xf32, #tpu.memory_space<vmem>>, %arg14: memref<2x1x64xf32, #tpu.memory_space<vmem>>, %arg15: memref<2x1x64xf32, #tpu.memory_space<vmem>>, %arg16: memref<2x64x256xbf16, #tpu.memory_space<vmem>>, %arg17: memref<2x1x256xf32, #tpu.memory_space<vmem>>, %arg18: memref<2x256x64xbf16, #tpu.memory_space<vmem>>, %arg19: memref<2x1x64xf32, #tpu.memory_space<vmem>>, %arg20: memref<2x1x64xf32, #tpu.memory_space<vmem>>, %arg21: memref<1x64xf32, #tpu.memory_space<vmem>>, %arg22: memref<1x64xf32, #tpu.memory_space<vmem>>, %arg23: memref<16x128xf32, #tpu.memory_space<vmem>>) attributes {dimension_semantics = [], scalar_prefetch = 0 : i64, scratch_operands = 0 : i64, tpu.core_type = #tpu.core_type<tc>} {
    %c0 = arith.constant 0 : index
    %c0_0 = arith.constant 0 : index
    %0 = vector.load %arg0[%c0, %c0_0] : memref<16x588xbf16, #tpu.memory_space<vmem>>, vector<16x588xbf16>
    %c0_1 = arith.constant 0 : index
    %c0_2 = arith.constant 0 : index
    %1 = vector.load %arg1[%c0_1, %c0_2] : memref<588x64xbf16, #tpu.memory_space<vmem>>, vector<588x64xbf16>
    %cst = arith.constant dense<0.000000e+00> : vector<16x64xf32>
    %2 = tpu.matmul %0, %1, %cst {dimension_numbers = #tpu.dot_dimension_numbers<[1], [0], [0], [1], [0, 0, 1, 1], [], []>} : vector<16x588xbf16>, vector<588x64xbf16>, vector<16x64xf32> -> vector<16x64xf32>
    %3 = vector.shape_cast %2 : vector<16x64xf32> to vector<2x8x64xf32>
    %c0_3 = arith.constant 0 : index
    %c0_4 = arith.constant 0 : index
    %4 = vector.load %arg2[%c0_3, %c0_4] : memref<8x64xf32, #tpu.memory_space<vmem>>, vector<8x64xf32>
    %5 = vector.shape_cast %4 : vector<8x64xf32> to vector<1x8x64xf32>
    %6 = vector.broadcast %5 : vector<1x8x64xf32> to vector<2x8x64xf32>
    %7 = arith.addf %3, %6 : vector<2x8x64xf32>
    %8 = vector.shape_cast %7 : vector<2x8x64xf32> to vector<16x64xf32>
    %9 = tpu.iota {dimensions = array<i32: 2>} : vector<1x1x8xi32>
    %c5_i32 = arith.constant 5 : i32
    %10 = vector.broadcast %c5_i32 : i32 to vector<1x1x8xi32>
    %11 = arith.cmpi slt, %9, %10 : vector<1x1x8xi32>
    %c0_5 = arith.constant 0 : index
    %c0_6 = arith.constant 0 : index
    %c0_7 = arith.constant 0 : index
    %12 = vector.load %arg3[%c0_5, %c0_6, %c0_7] : memref<2x1x64xf32, #tpu.memory_space<vmem>>, vector<1x1x64xf32>
    %13 = vector.shape_cast %12 : vector<1x1x64xf32> to vector<1x64xf32>
    %c0_8 = arith.constant 0 : index
    %c0_9 = arith.constant 0 : index
    %c0_10 = arith.constant 0 : index
    %14 = vector.load %arg4[%c0_8, %c0_9, %c0_10] : memref<2x1x64xf32, #tpu.memory_space<vmem>>, vector<1x1x64xf32>
    %15 = vector.shape_cast %14 : vector<1x1x64xf32> to vector<1x64xf32>
    %cst_11 = arith.constant dense<0.000000e+00> : vector<16xf32>
    %16 = vector.multi_reduction <add>, %8, %cst_11 [1] : vector<16x64xf32> to vector<16xf32>
    %17 = vector.shape_cast %16 : vector<16xf32> to vector<16x1xf32>
    %cst_12 = arith.constant 6.400000e+01 : f32
    %18 = vector.broadcast %cst_12 : f32 to vector<16x1xf32>
    %19 = arith.divf %17, %18 : vector<16x1xf32>
    %20 = vector.broadcast %19 : vector<16x1xf32> to vector<16x64xf32>
    %21 = arith.subf %8, %20 : vector<16x64xf32>
    %22 = arith.mulf %21, %21 : vector<16x64xf32>
    %cst_13 = arith.constant dense<0.000000e+00> : vector<16xf32>
    %23 = vector.multi_reduction <add>, %22, %cst_13 [1] : vector<16x64xf32> to vector<16xf32>
    %24 = vector.shape_cast %23 : vector<16xf32> to vector<16x1xf32>
    %cst_14 = arith.constant 6.400000e+01 : f32
    %25 = vector.broadcast %cst_14 : f32 to vector<16x1xf32>
    %26 = arith.divf %24, %25 : vector<16x1xf32>
    %27 = vector.broadcast %19 : vector<16x1xf32> to vector<16x64xf32>
    %28 = arith.subf %8, %27 : vector<16x64xf32>
    %cst_15 = arith.constant 9.99999997E-7 : f32
    %29 = vector.broadcast %cst_15 : f32 to vector<16x1xf32>
    %30 = arith.addf %26, %29 : vector<16x1xf32>
    %31 = math.rsqrt %30 : vector<16x1xf32>
    %32 = vector.broadcast %31 : vector<16x1xf32> to vector<16x64xf32>
    %33 = arith.mulf %28, %32 : vector<16x64xf32>
    %34 = vector.broadcast %13 : vector<1x64xf32> to vector<16x64xf32>
    %35 = arith.mulf %33, %34 : vector<16x64xf32>
    %36 = vector.broadcast %15 : vector<1x64xf32> to vector<16x64xf32>
    %37 = arith.addf %35, %36 : vector<16x64xf32>
    %38 = arith.truncf %37 : vector<16x64xf32> to vector<16x64xbf16>
    %c0_16 = arith.constant 0 : index
    %c0_17 = arith.constant 0 : index
    %c0_18 = arith.constant 0 : index
    %39 = vector.load %arg12[%c0_16, %c0_17, %c0_18] : memref<2x1x64xf32, #tpu.memory_space<vmem>>, vector<1x1x64xf32>
    %40 = vector.shape_cast %39 : vector<1x1x64xf32> to vector<1x64xf32>
    %c0_19 = arith.constant 0 : index
    %c0_20 = arith.constant 0 : index
    %c0_21 = arith.constant 0 : index
    %c0_22 = arith.constant 0 : index
    %41 = vector.load %arg5[%c0_19, %c0_20, %c0_21, %c0_22] : memref<2x2x64x32xbf16, #tpu.memory_space<vmem>>, vector<1x1x64x32xbf16>
    %42 = vector.shape_cast %41 : vector<1x1x64x32xbf16> to vector<64x32xbf16>
    %cst_23 = arith.constant dense<0.000000e+00> : vector<16x32xf32>
    %43 = tpu.matmul %38, %42, %cst_23 {dimension_numbers = #tpu.dot_dimension_numbers<[1], [0], [0], [1], [0, 0, 1, 1], [], []>} : vector<16x64xbf16>, vector<64x32xbf16>, vector<16x32xf32> -> vector<16x32xf32>
    %c0_24 = arith.constant 0 : index
    %c0_25 = arith.constant 0 : index
    %c0_26 = arith.constant 0 : index
    %c0_27 = arith.constant 0 : index
    %44 = vector.load %arg8[%c0_24, %c0_25, %c0_26, %c0_27] : memref<2x2x1x32xf32, #tpu.memory_space<vmem>>, vector<1x1x1x32xf32>
    %45 = vector.shape_cast %44 : vector<1x1x1x32xf32> to vector<1x32xf32>
    %46 = vector.broadcast %45 : vector<1x32xf32> to vector<16x32xf32>
    %47 = arith.addf %43, %46 : vector<16x32xf32>
    %48 = vector.shape_cast %47 : vector<16x32xf32> to vector<2x8x32xf32>
    %c0_28 = arith.constant 0 : index
    %c0_29 = arith.constant 0 : index
    %c0_30 = arith.constant 0 : index
    %c0_31 = arith.constant 0 : index
    %49 = vector.load %arg6[%c0_28, %c0_29, %c0_30, %c0_31] : memref<2x2x64x32xbf16, #tpu.memory_space<vmem>>, vector<1x1x64x32xbf16>
    %50 = vector.shape_cast %49 : vector<1x1x64x32xbf16> to vector<64x32xbf16>
    %cst_32 = arith.constant dense<0.000000e+00> : vector<16x32xf32>
    %51 = tpu.matmul %38, %50, %cst_32 {dimension_numbers = #tpu.dot_dimension_numbers<[1], [0], [0], [1], [0, 0, 1, 1], [], []>} : vector<16x64xbf16>, vector<64x32xbf16>, vector<16x32xf32> -> vector<16x32xf32>
    %c0_33 = arith.constant 0 : index
    %c0_34 = arith.constant 0 : index
    %c0_35 = arith.constant 0 : index
    %c0_36 = arith.constant 0 : index
    %52 = vector.load %arg9[%c0_33, %c0_34, %c0_35, %c0_36] : memref<2x2x1x32xf32, #tpu.memory_space<vmem>>, vector<1x1x1x32xf32>
    %53 = vector.shape_cast %52 : vector<1x1x1x32xf32> to vector<1x32xf32>
    %54 = vector.broadcast %53 : vector<1x32xf32> to vector<16x32xf32>
    %55 = arith.addf %51, %54 : vector<16x32xf32>
    %56 = vector.shape_cast %55 : vector<16x32xf32> to vector<2x8x32xf32>
    %c0_37 = arith.constant 0 : index
    %c0_38 = arith.constant 0 : index
    %c0_39 = arith.constant 0 : index
    %c0_40 = arith.constant 0 : index
    %57 = vector.load %arg7[%c0_37, %c0_38, %c0_39, %c0_40] : memref<2x2x64x32xbf16, #tpu.memory_space<vmem>>, vector<1x1x64x32xbf16>
    %58 = vector.shape_cast %57 : vector<1x1x64x32xbf16> to vector<64x32xbf16>
    %cst_41 = arith.constant dense<0.000000e+00> : vector<16x32xf32>
    %59 = tpu.matmul %38, %58, %cst_41 {dimension_numbers = #tpu.dot_dimension_numbers<[1], [0], [0], [1], [0, 0, 1, 1], [], []>} : vector<16x64xbf16>, vector<64x32xbf16>, vector<16x32xf32> -> vector<16x32xf32>
    %c0_42 = arith.constant 0 : index
    %c0_43 = arith.constant 0 : index
    %c0_44 = arith.constant 0 : index
    %c0_45 = arith.constant 0 : index
    %60 = vector.load %arg10[%c0_42, %c0_43, %c0_44, %c0_45] : memref<2x2x1x32xf32, #tpu.memory_space<vmem>>, vector<1x1x1x32xf32>
    %61 = vector.shape_cast %60 : vector<1x1x1x32xf32> to vector<1x32xf32>
    %62 = vector.broadcast %61 : vector<1x32xf32> to vector<16x32xf32>
    %63 = arith.addf %59, %62 : vector<16x32xf32>
    %64 = vector.shape_cast %63 : vector<16x32xf32> to vector<2x8x32xf32>
    %65 = arith.truncf %48 : vector<2x8x32xf32> to vector<2x8x32xbf16>
    %66 = arith.truncf %56 : vector<2x8x32xf32> to vector<2x8x32xbf16>
    "tpu.trace_start"() <{level = 10 : i32, message = "bnd,bmd->bnm"}> : () -> ()
    %cst_46 = arith.constant dense<0.000000e+00> : vector<2x8x8xf32>
    %67 = tpu.matmul %65, %66, %cst_46 {dimension_numbers = #tpu.dot_dimension_numbers<[2], [2], [1], [1], [0, 0, 0, 1, 1, 1], [0], [0]>} : vector<2x8x32xbf16>, vector<2x8x32xbf16>, vector<2x8x8xf32> -> vector<2x8x8xf32>
    %cst_47 = arith.constant -1.000000e+30 : f32
    "tpu.trace_stop"() : () -> ()
    %68 = vector.shape_cast %11 : vector<1x1x8xi1> to vector<1x1x8xi1>
    %69 = vector.broadcast %68 : vector<1x1x8xi1> to vector<2x8x8xi1>
    %70 = vector.broadcast %cst_47 : f32 to vector<2x8x8xf32>
    %71 = arith.select %69, %67, %70 : vector<2x8x8xi1>, vector<2x8x8xf32>
    %cst_48 = arith.constant dense<0xFF800000> : vector<2x8xf32>
    %72 = vector.multi_reduction <maximumf>, %71, %cst_48 [2] : vector<2x8x8xf32> to vector<2x8xf32>
    %73 = vector.shape_cast %72 : vector<2x8xf32> to vector<2x8x1xf32>
    %74 = vector.broadcast %73 : vector<2x8x1xf32> to vector<2x8x8xf32>
    %75 = arith.subf %71, %74 : vector<2x8x8xf32>
    %76 = math.exp %75 : vector<2x8x8xf32>
    %cst_49 = arith.constant dense<0.000000e+00> : vector<2x8xf32>
    %77 = vector.multi_reduction <add>, %76, %cst_49 [2] : vector<2x8x8xf32> to vector<2x8xf32>
    %78 = vector.shape_cast %77 : vector<2x8xf32> to vector<2x8x1xf32>
    %79 = tpu.reciprocal %78 {approx = true} : vector<2x8x1xf32> -> vector<2x8x1xf32>
    %80 = vector.broadcast %79 : vector<2x8x1xf32> to vector<2x8x8xf32>
    %81 = arith.mulf %76, %80 : vector<2x8x8xf32>
    %82 = arith.truncf %81 : vector<2x8x8xf32> to vector<2x8x8xbf16>
    %83 = arith.truncf %64 : vector<2x8x32xf32> to vector<2x8x32xbf16>
    "tpu.trace_start"() <{level = 10 : i32, message = "bnm,bmd->bnd"}> : () -> ()
    %cst_50 = arith.constant dense<0.000000e+00> : vector<2x8x32xf32>
    %84 = tpu.matmul %82, %83, %cst_50 {dimension_numbers = #tpu.dot_dimension_numbers<[2], [1], [1], [2], [0, 0, 0, 1, 1, 2], [0], [0]>} : vector<2x8x8xbf16>, vector<2x8x32xbf16>, vector<2x8x32xf32> -> vector<2x8x32xf32>
    "tpu.trace_stop"() : () -> ()
    %85 = vector.shape_cast %84 : vector<2x8x32xf32> to vector<16x32xf32>
    %86 = arith.truncf %85 : vector<16x32xf32> to vector<16x32xbf16>
    %c0_51 = arith.constant 0 : index
    %c0_52 = arith.constant 0 : index
    %c0_53 = arith.constant 0 : index
    %c0_54 = arith.constant 0 : index
    %87 = vector.load %arg11[%c0_51, %c0_52, %c0_53, %c0_54] : memref<2x2x32x64xbf16, #tpu.memory_space<vmem>>, vector<1x1x32x64xbf16>
    %88 = vector.shape_cast %87 : vector<1x1x32x64xbf16> to vector<32x64xbf16>
    %cst_55 = arith.constant dense<0.000000e+00> : vector<16x64xf32>
    %89 = tpu.matmul %86, %88, %cst_55 {dimension_numbers = #tpu.dot_dimension_numbers<[1], [0], [0], [1], [0, 0, 1, 1], [], []>} : vector<16x32xbf16>, vector<32x64xbf16>, vector<16x64xf32> -> vector<16x64xf32>
    %90 = vector.broadcast %40 : vector<1x64xf32> to vector<16x64xf32>
    %91 = arith.addf %90, %89 : vector<16x64xf32>
    %c0_56 = arith.constant 0 : index
    %c1 = arith.constant 1 : index
    %c0_57 = arith.constant 0 : index
    %c0_58 = arith.constant 0 : index
    %92 = vector.load %arg5[%c0_56, %c1, %c0_57, %c0_58] : memref<2x2x64x32xbf16, #tpu.memory_space<vmem>>, vector<1x1x64x32xbf16>
    %93 = vector.shape_cast %92 : vector<1x1x64x32xbf16> to vector<64x32xbf16>
    %cst_59 = arith.constant dense<0.000000e+00> : vector<16x32xf32>
    %94 = tpu.matmul %38, %93, %cst_59 {dimension_numbers = #tpu.dot_dimension_numbers<[1], [0], [0], [1], [0, 0, 1, 1], [], []>} : vector<16x64xbf16>, vector<64x32xbf16>, vector<16x32xf32> -> vector<16x32xf32>
    %c0_60 = arith.constant 0 : index
    %c1_61 = arith.constant 1 : index
    %c0_62 = arith.constant 0 : index
    %c0_63 = arith.constant 0 : index
    %95 = vector.load %arg8[%c0_60, %c1_61, %c0_62, %c0_63] : memref<2x2x1x32xf32, #tpu.memory_space<vmem>>, vector<1x1x1x32xf32>
    %96 = vector.shape_cast %95 : vector<1x1x1x32xf32> to vector<1x32xf32>
    %97 = vector.broadcast %96 : vector<1x32xf32> to vector<16x32xf32>
    %98 = arith.addf %94, %97 : vector<16x32xf32>
    %99 = vector.shape_cast %98 : vector<16x32xf32> to vector<2x8x32xf32>
    %c0_64 = arith.constant 0 : index
    %c1_65 = arith.constant 1 : index
    %c0_66 = arith.constant 0 : index
    %c0_67 = arith.constant 0 : index
    %100 = vector.load %arg6[%c0_64, %c1_65, %c0_66, %c0_67] : memref<2x2x64x32xbf16, #tpu.memory_space<vmem>>, vector<1x1x64x32xbf16>
    %101 = vector.shape_cast %100 : vector<1x1x64x32xbf16> to vector<64x32xbf16>
    %cst_68 = arith.constant dense<0.000000e+00> : vector<16x32xf32>
    %102 = tpu.matmul %38, %101, %cst_68 {dimension_numbers = #tpu.dot_dimension_numbers<[1], [0], [0], [1], [0, 0, 1, 1], [], []>} : vector<16x64xbf16>, vector<64x32xbf16>, vector<16x32xf32> -> vector<16x32xf32>
    %c0_69 = arith.constant 0 : index
    %c1_70 = arith.constant 1 : index
    %c0_71 = arith.constant 0 : index
    %c0_72 = arith.constant 0 : index
    %103 = vector.load %arg9[%c0_69, %c1_70, %c0_71, %c0_72] : memref<2x2x1x32xf32, #tpu.memory_space<vmem>>, vector<1x1x1x32xf32>
    %104 = vector.shape_cast %103 : vector<1x1x1x32xf32> to vector<1x32xf32>
    %105 = vector.broadcast %104 : vector<1x32xf32> to vector<16x32xf32>
    %106 = arith.addf %102, %105 : vector<16x32xf32>
    %107 = vector.shape_cast %106 : vector<16x32xf32> to vector<2x8x32xf32>
    %c0_73 = arith.constant 0 : index
    %c1_74 = arith.constant 1 : index
    %c0_75 = arith.constant 0 : index
    %c0_76 = arith.constant 0 : index
    %108 = vector.load %arg7[%c0_73, %c1_74, %c0_75, %c0_76] : memref<2x2x64x32xbf16, #tpu.memory_space<vmem>>, vector<1x1x64x32xbf16>
    %109 = vector.shape_cast %108 : vector<1x1x64x32xbf16> to vector<64x32xbf16>
    %cst_77 = arith.constant dense<0.000000e+00> : vector<16x32xf32>
    %110 = tpu.matmul %38, %109, %cst_77 {dimension_numbers = #tpu.dot_dimension_numbers<[1], [0], [0], [1], [0, 0, 1, 1], [], []>} : vector<16x64xbf16>, vector<64x32xbf16>, vector<16x32xf32> -> vector<16x32xf32>
    %c0_78 = arith.constant 0 : index
    %c1_79 = arith.constant 1 : index
    %c0_80 = arith.constant 0 : index
    %c0_81 = arith.constant 0 : index
    %111 = vector.load %arg10[%c0_78, %c1_79, %c0_80, %c0_81] : memref<2x2x1x32xf32, #tpu.memory_space<vmem>>, vector<1x1x1x32xf32>
    %112 = vector.shape_cast %111 : vector<1x1x1x32xf32> to vector<1x32xf32>
    %113 = vector.broadcast %112 : vector<1x32xf32> to vector<16x32xf32>
    %114 = arith.addf %110, %113 : vector<16x32xf32>
    %115 = vector.shape_cast %114 : vector<16x32xf32> to vector<2x8x32xf32>
    %116 = arith.truncf %99 : vector<2x8x32xf32> to vector<2x8x32xbf16>
    %117 = arith.truncf %107 : vector<2x8x32xf32> to vector<2x8x32xbf16>
    "tpu.trace_start"() <{level = 10 : i32, message = "bnd,bmd->bnm"}> : () -> ()
    %cst_82 = arith.constant dense<0.000000e+00> : vector<2x8x8xf32>
    %118 = tpu.matmul %116, %117, %cst_82 {dimension_numbers = #tpu.dot_dimension_numbers<[2], [2], [1], [1], [0, 0, 0, 1, 1, 1], [0], [0]>} : vector<2x8x32xbf16>, vector<2x8x32xbf16>, vector<2x8x8xf32> -> vector<2x8x8xf32>
    %cst_83 = arith.constant -1.000000e+30 : f32
    "tpu.trace_stop"() : () -> ()
    %119 = vector.shape_cast %11 : vector<1x1x8xi1> to vector<1x1x8xi1>
    %120 = vector.broadcast %119 : vector<1x1x8xi1> to vector<2x8x8xi1>
    %121 = vector.broadcast %cst_83 : f32 to vector<2x8x8xf32>
    %122 = arith.select %120, %118, %121 : vector<2x8x8xi1>, vector<2x8x8xf32>
    %cst_84 = arith.constant dense<0xFF800000> : vector<2x8xf32>
    %123 = vector.multi_reduction <maximumf>, %122, %cst_84 [2] : vector<2x8x8xf32> to vector<2x8xf32>
    %124 = vector.shape_cast %123 : vector<2x8xf32> to vector<2x8x1xf32>
    %125 = vector.broadcast %124 : vector<2x8x1xf32> to vector<2x8x8xf32>
    %126 = arith.subf %122, %125 : vector<2x8x8xf32>
    %127 = math.exp %126 : vector<2x8x8xf32>
    %cst_85 = arith.constant dense<0.000000e+00> : vector<2x8xf32>
    %128 = vector.multi_reduction <add>, %127, %cst_85 [2] : vector<2x8x8xf32> to vector<2x8xf32>
    %129 = vector.shape_cast %128 : vector<2x8xf32> to vector<2x8x1xf32>
    %130 = tpu.reciprocal %129 {approx = true} : vector<2x8x1xf32> -> vector<2x8x1xf32>
    %131 = vector.broadcast %130 : vector<2x8x1xf32> to vector<2x8x8xf32>
    %132 = arith.mulf %127, %131 : vector<2x8x8xf32>
    %133 = arith.truncf %132 : vector<2x8x8xf32> to vector<2x8x8xbf16>
    %134 = arith.truncf %115 : vector<2x8x32xf32> to vector<2x8x32xbf16>
    "tpu.trace_start"() <{level = 10 : i32, message = "bnm,bmd->bnd"}> : () -> ()
    %cst_86 = arith.constant dense<0.000000e+00> : vector<2x8x32xf32>
    %135 = tpu.matmul %133, %134, %cst_86 {dimension_numbers = #tpu.dot_dimension_numbers<[2], [1], [1], [2], [0, 0, 0, 1, 1, 2], [0], [0]>} : vector<2x8x8xbf16>, vector<2x8x32xbf16>, vector<2x8x32xf32> -> vector<2x8x32xf32>
    "tpu.trace_stop"() : () -> ()
    %136 = vector.shape_cast %135 : vector<2x8x32xf32> to vector<16x32xf32>
    %137 = arith.truncf %136 : vector<16x32xf32> to vector<16x32xbf16>
    %c0_87 = arith.constant 0 : index
    %c1_88 = arith.constant 1 : index
    %c0_89 = arith.constant 0 : index
    %c0_90 = arith.constant 0 : index
    %138 = vector.load %arg11[%c0_87, %c1_88, %c0_89, %c0_90] : memref<2x2x32x64xbf16, #tpu.memory_space<vmem>>, vector<1x1x32x64xbf16>
    %139 = vector.shape_cast %138 : vector<1x1x32x64xbf16> to vector<32x64xbf16>
    %cst_91 = arith.constant dense<0.000000e+00> : vector<16x64xf32>
    %140 = tpu.matmul %137, %139, %cst_91 {dimension_numbers = #tpu.dot_dimension_numbers<[1], [0], [0], [1], [0, 0, 1, 1], [], []>} : vector<16x32xbf16>, vector<32x64xbf16>, vector<16x64xf32> -> vector<16x64xf32>
    %141 = arith.addf %91, %140 : vector<16x64xf32>
    %c0_92 = arith.constant 0 : index
    %c0_93 = arith.constant 0 : index
    %c0_94 = arith.constant 0 : index
    %142 = vector.load %arg13[%c0_92, %c0_93, %c0_94] : memref<2x1x64xf32, #tpu.memory_space<vmem>>, vector<1x1x64xf32>
    %143 = vector.shape_cast %142 : vector<1x1x64xf32> to vector<1x64xf32>
    %144 = vector.broadcast %143 : vector<1x64xf32> to vector<16x64xf32>
    %145 = arith.mulf %144, %141 : vector<16x64xf32>
    %146 = arith.addf %8, %145 : vector<16x64xf32>
    %c0_95 = arith.constant 0 : index
    %c0_96 = arith.constant 0 : index
    %c0_97 = arith.constant 0 : index
    %147 = vector.load %arg14[%c0_95, %c0_96, %c0_97] : memref<2x1x64xf32, #tpu.memory_space<vmem>>, vector<1x1x64xf32>
    %148 = vector.shape_cast %147 : vector<1x1x64xf32> to vector<1x64xf32>
    %c0_98 = arith.constant 0 : index
    %c0_99 = arith.constant 0 : index
    %c0_100 = arith.constant 0 : index
    %149 = vector.load %arg15[%c0_98, %c0_99, %c0_100] : memref<2x1x64xf32, #tpu.memory_space<vmem>>, vector<1x1x64xf32>
    %150 = vector.shape_cast %149 : vector<1x1x64xf32> to vector<1x64xf32>
    %cst_101 = arith.constant dense<0.000000e+00> : vector<16xf32>
    %151 = vector.multi_reduction <add>, %146, %cst_101 [1] : vector<16x64xf32> to vector<16xf32>
    %152 = vector.shape_cast %151 : vector<16xf32> to vector<16x1xf32>
    %cst_102 = arith.constant 6.400000e+01 : f32
    %153 = vector.broadcast %cst_102 : f32 to vector<16x1xf32>
    %154 = arith.divf %152, %153 : vector<16x1xf32>
    %155 = vector.broadcast %154 : vector<16x1xf32> to vector<16x64xf32>
    %156 = arith.subf %146, %155 : vector<16x64xf32>
    %157 = arith.mulf %156, %156 : vector<16x64xf32>
    %cst_103 = arith.constant dense<0.000000e+00> : vector<16xf32>
    %158 = vector.multi_reduction <add>, %157, %cst_103 [1] : vector<16x64xf32> to vector<16xf32>
    %159 = vector.shape_cast %158 : vector<16xf32> to vector<16x1xf32>
    %cst_104 = arith.constant 6.400000e+01 : f32
    %160 = vector.broadcast %cst_104 : f32 to vector<16x1xf32>
    %161 = arith.divf %159, %160 : vector<16x1xf32>
    %162 = vector.broadcast %154 : vector<16x1xf32> to vector<16x64xf32>
    %163 = arith.subf %146, %162 : vector<16x64xf32>
    %cst_105 = arith.constant 9.99999997E-7 : f32
    %164 = vector.broadcast %cst_105 : f32 to vector<16x1xf32>
    %165 = arith.addf %161, %164 : vector<16x1xf32>
    %166 = math.rsqrt %165 : vector<16x1xf32>
    %167 = vector.broadcast %166 : vector<16x1xf32> to vector<16x64xf32>
    %168 = arith.mulf %163, %167 : vector<16x64xf32>
    %169 = vector.broadcast %148 : vector<1x64xf32> to vector<16x64xf32>
    %170 = arith.mulf %168, %169 : vector<16x64xf32>
    %171 = vector.broadcast %150 : vector<1x64xf32> to vector<16x64xf32>
    %172 = arith.addf %170, %171 : vector<16x64xf32>
    %173 = arith.truncf %172 : vector<16x64xf32> to vector<16x64xbf16>
    %c0_106 = arith.constant 0 : index
    %c0_107 = arith.constant 0 : index
    %c0_108 = arith.constant 0 : index
    %174 = vector.load %arg16[%c0_106, %c0_107, %c0_108] : memref<2x64x256xbf16, #tpu.memory_space<vmem>>, vector<1x64x256xbf16>
    %175 = vector.shape_cast %174 : vector<1x64x256xbf16> to vector<64x256xbf16>
    %cst_109 = arith.constant dense<0.000000e+00> : vector<16x256xf32>
    %176 = tpu.matmul %173, %175, %cst_109 {dimension_numbers = #tpu.dot_dimension_numbers<[1], [0], [0], [1], [0, 0, 1, 1], [], []>} : vector<16x64xbf16>, vector<64x256xbf16>, vector<16x256xf32> -> vector<16x256xf32>
    %c0_110 = arith.constant 0 : index
    %c0_111 = arith.constant 0 : index
    %c0_112 = arith.constant 0 : index
    %177 = vector.load %arg17[%c0_110, %c0_111, %c0_112] : memref<2x1x256xf32, #tpu.memory_space<vmem>>, vector<1x1x256xf32>
    %178 = vector.shape_cast %177 : vector<1x1x256xf32> to vector<1x256xf32>
    %179 = vector.broadcast %178 : vector<1x256xf32> to vector<16x256xf32>
    %180 = arith.addf %176, %179 : vector<16x256xf32>
    %181 = arith.mulf %180, %180 : vector<16x256xf32>
    %182 = arith.mulf %180, %181 : vector<16x256xf32>
    %cst_113 = arith.constant 4.471500e-02 : f32
    %183 = vector.broadcast %cst_113 : f32 to vector<16x256xf32>
    %184 = arith.mulf %183, %182 : vector<16x256xf32>
    %185 = arith.addf %180, %184 : vector<16x256xf32>
    %cst_114 = arith.constant 0.797884583 : f32
    %186 = vector.broadcast %cst_114 : f32 to vector<16x256xf32>
    %187 = arith.mulf %186, %185 : vector<16x256xf32>
    %188 = math.tanh %187 : vector<16x256xf32>
    %cst_115 = arith.constant 1.000000e+00 : f32
    %189 = vector.broadcast %cst_115 : f32 to vector<16x256xf32>
    %190 = arith.addf %189, %188 : vector<16x256xf32>
    %cst_116 = arith.constant 5.000000e-01 : f32
    %191 = vector.broadcast %cst_116 : f32 to vector<16x256xf32>
    %192 = arith.mulf %191, %190 : vector<16x256xf32>
    %193 = arith.mulf %180, %192 : vector<16x256xf32>
    %194 = arith.truncf %193 : vector<16x256xf32> to vector<16x256xbf16>
    %c0_117 = arith.constant 0 : index
    %c0_118 = arith.constant 0 : index
    %c0_119 = arith.constant 0 : index
    %195 = vector.load %arg18[%c0_117, %c0_118, %c0_119] : memref<2x256x64xbf16, #tpu.memory_space<vmem>>, vector<1x256x64xbf16>
    %196 = vector.shape_cast %195 : vector<1x256x64xbf16> to vector<256x64xbf16>
    %cst_120 = arith.constant dense<0.000000e+00> : vector<16x64xf32>
    %197 = tpu.matmul %194, %196, %cst_120 {dimension_numbers = #tpu.dot_dimension_numbers<[1], [0], [0], [1], [0, 0, 1, 1], [], []>} : vector<16x256xbf16>, vector<256x64xbf16>, vector<16x64xf32> -> vector<16x64xf32>
    %c0_121 = arith.constant 0 : index
    %c0_122 = arith.constant 0 : index
    %c0_123 = arith.constant 0 : index
    %198 = vector.load %arg19[%c0_121, %c0_122, %c0_123] : memref<2x1x64xf32, #tpu.memory_space<vmem>>, vector<1x1x64xf32>
    %199 = vector.shape_cast %198 : vector<1x1x64xf32> to vector<1x64xf32>
    %200 = vector.broadcast %199 : vector<1x64xf32> to vector<16x64xf32>
    %201 = arith.addf %197, %200 : vector<16x64xf32>
    %c0_124 = arith.constant 0 : index
    %c0_125 = arith.constant 0 : index
    %c0_126 = arith.constant 0 : index
    %202 = vector.load %arg20[%c0_124, %c0_125, %c0_126] : memref<2x1x64xf32, #tpu.memory_space<vmem>>, vector<1x1x64xf32>
    %203 = vector.shape_cast %202 : vector<1x1x64xf32> to vector<1x64xf32>
    %204 = vector.broadcast %203 : vector<1x64xf32> to vector<16x64xf32>
    %205 = arith.mulf %204, %201 : vector<16x64xf32>
    %206 = arith.addf %146, %205 : vector<16x64xf32>
    %c1_127 = arith.constant 1 : index
    %c0_128 = arith.constant 0 : index
    %c0_129 = arith.constant 0 : index
    %207 = vector.load %arg3[%c1_127, %c0_128, %c0_129] : memref<2x1x64xf32, #tpu.memory_space<vmem>>, vector<1x1x64xf32>
    %208 = vector.shape_cast %207 : vector<1x1x64xf32> to vector<1x64xf32>
    %c1_130 = arith.constant 1 : index
    %c0_131 = arith.constant 0 : index
    %c0_132 = arith.constant 0 : index
    %209 = vector.load %arg4[%c1_130, %c0_131, %c0_132] : memref<2x1x64xf32, #tpu.memory_space<vmem>>, vector<1x1x64xf32>
    %210 = vector.shape_cast %209 : vector<1x1x64xf32> to vector<1x64xf32>
    %cst_133 = arith.constant dense<0.000000e+00> : vector<16xf32>
    %211 = vector.multi_reduction <add>, %206, %cst_133 [1] : vector<16x64xf32> to vector<16xf32>
    %212 = vector.shape_cast %211 : vector<16xf32> to vector<16x1xf32>
    %cst_134 = arith.constant 6.400000e+01 : f32
    %213 = vector.broadcast %cst_134 : f32 to vector<16x1xf32>
    %214 = arith.divf %212, %213 : vector<16x1xf32>
    %215 = vector.broadcast %214 : vector<16x1xf32> to vector<16x64xf32>
    %216 = arith.subf %206, %215 : vector<16x64xf32>
    %217 = arith.mulf %216, %216 : vector<16x64xf32>
    %cst_135 = arith.constant dense<0.000000e+00> : vector<16xf32>
    %218 = vector.multi_reduction <add>, %217, %cst_135 [1] : vector<16x64xf32> to vector<16xf32>
    %219 = vector.shape_cast %218 : vector<16xf32> to vector<16x1xf32>
    %cst_136 = arith.constant 6.400000e+01 : f32
    %220 = vector.broadcast %cst_136 : f32 to vector<16x1xf32>
    %221 = arith.divf %219, %220 : vector<16x1xf32>
    %222 = vector.broadcast %214 : vector<16x1xf32> to vector<16x64xf32>
    %223 = arith.subf %206, %222 : vector<16x64xf32>
    %cst_137 = arith.constant 9.99999997E-7 : f32
    %224 = vector.broadcast %cst_137 : f32 to vector<16x1xf32>
    %225 = arith.addf %221, %224 : vector<16x1xf32>
    %226 = math.rsqrt %225 : vector<16x1xf32>
    %227 = vector.broadcast %226 : vector<16x1xf32> to vector<16x64xf32>
    %228 = arith.mulf %223, %227 : vector<16x64xf32>
    %229 = vector.broadcast %208 : vector<1x64xf32> to vector<16x64xf32>
    %230 = arith.mulf %228, %229 : vector<16x64xf32>
    %231 = vector.broadcast %210 : vector<1x64xf32> to vector<16x64xf32>
    %232 = arith.addf %230, %231 : vector<16x64xf32>
    %233 = arith.truncf %232 : vector<16x64xf32> to vector<16x64xbf16>
    %c1_138 = arith.constant 1 : index
    %c0_139 = arith.constant 0 : index
    %c0_140 = arith.constant 0 : index
    %234 = vector.load %arg12[%c1_138, %c0_139, %c0_140] : memref<2x1x64xf32, #tpu.memory_space<vmem>>, vector<1x1x64xf32>
    %235 = vector.shape_cast %234 : vector<1x1x64xf32> to vector<1x64xf32>
    %c1_141 = arith.constant 1 : index
    %c0_142 = arith.constant 0 : index
    %c0_143 = arith.constant 0 : index
    %c0_144 = arith.constant 0 : index
    %236 = vector.load %arg5[%c1_141, %c0_142, %c0_143, %c0_144] : memref<2x2x64x32xbf16, #tpu.memory_space<vmem>>, vector<1x1x64x32xbf16>
    %237 = vector.shape_cast %236 : vector<1x1x64x32xbf16> to vector<64x32xbf16>
    %cst_145 = arith.constant dense<0.000000e+00> : vector<16x32xf32>
    %238 = tpu.matmul %233, %237, %cst_145 {dimension_numbers = #tpu.dot_dimension_numbers<[1], [0], [0], [1], [0, 0, 1, 1], [], []>} : vector<16x64xbf16>, vector<64x32xbf16>, vector<16x32xf32> -> vector<16x32xf32>
    %c1_146 = arith.constant 1 : index
    %c0_147 = arith.constant 0 : index
    %c0_148 = arith.constant 0 : index
    %c0_149 = arith.constant 0 : index
    %239 = vector.load %arg8[%c1_146, %c0_147, %c0_148, %c0_149] : memref<2x2x1x32xf32, #tpu.memory_space<vmem>>, vector<1x1x1x32xf32>
    %240 = vector.shape_cast %239 : vector<1x1x1x32xf32> to vector<1x32xf32>
    %241 = vector.broadcast %240 : vector<1x32xf32> to vector<16x32xf32>
    %242 = arith.addf %238, %241 : vector<16x32xf32>
    %243 = vector.shape_cast %242 : vector<16x32xf32> to vector<2x8x32xf32>
    %c1_150 = arith.constant 1 : index
    %c0_151 = arith.constant 0 : index
    %c0_152 = arith.constant 0 : index
    %c0_153 = arith.constant 0 : index
    %244 = vector.load %arg6[%c1_150, %c0_151, %c0_152, %c0_153] : memref<2x2x64x32xbf16, #tpu.memory_space<vmem>>, vector<1x1x64x32xbf16>
    %245 = vector.shape_cast %244 : vector<1x1x64x32xbf16> to vector<64x32xbf16>
    %cst_154 = arith.constant dense<0.000000e+00> : vector<16x32xf32>
    %246 = tpu.matmul %233, %245, %cst_154 {dimension_numbers = #tpu.dot_dimension_numbers<[1], [0], [0], [1], [0, 0, 1, 1], [], []>} : vector<16x64xbf16>, vector<64x32xbf16>, vector<16x32xf32> -> vector<16x32xf32>
    %c1_155 = arith.constant 1 : index
    %c0_156 = arith.constant 0 : index
    %c0_157 = arith.constant 0 : index
    %c0_158 = arith.constant 0 : index
    %247 = vector.load %arg9[%c1_155, %c0_156, %c0_157, %c0_158] : memref<2x2x1x32xf32, #tpu.memory_space<vmem>>, vector<1x1x1x32xf32>
    %248 = vector.shape_cast %247 : vector<1x1x1x32xf32> to vector<1x32xf32>
    %249 = vector.broadcast %248 : vector<1x32xf32> to vector<16x32xf32>
    %250 = arith.addf %246, %249 : vector<16x32xf32>
    %251 = vector.shape_cast %250 : vector<16x32xf32> to vector<2x8x32xf32>
    %c1_159 = arith.constant 1 : index
    %c0_160 = arith.constant 0 : index
    %c0_161 = arith.constant 0 : index
    %c0_162 = arith.constant 0 : index
    %252 = vector.load %arg7[%c1_159, %c0_160, %c0_161, %c0_162] : memref<2x2x64x32xbf16, #tpu.memory_space<vmem>>, vector<1x1x64x32xbf16>
    %253 = vector.shape_cast %252 : vector<1x1x64x32xbf16> to vector<64x32xbf16>
    %cst_163 = arith.constant dense<0.000000e+00> : vector<16x32xf32>
    %254 = tpu.matmul %233, %253, %cst_163 {dimension_numbers = #tpu.dot_dimension_numbers<[1], [0], [0], [1], [0, 0, 1, 1], [], []>} : vector<16x64xbf16>, vector<64x32xbf16>, vector<16x32xf32> -> vector<16x32xf32>
    %c1_164 = arith.constant 1 : index
    %c0_165 = arith.constant 0 : index
    %c0_166 = arith.constant 0 : index
    %c0_167 = arith.constant 0 : index
    %255 = vector.load %arg10[%c1_164, %c0_165, %c0_166, %c0_167] : memref<2x2x1x32xf32, #tpu.memory_space<vmem>>, vector<1x1x1x32xf32>
    %256 = vector.shape_cast %255 : vector<1x1x1x32xf32> to vector<1x32xf32>
    %257 = vector.broadcast %256 : vector<1x32xf32> to vector<16x32xf32>
    %258 = arith.addf %254, %257 : vector<16x32xf32>
    %259 = vector.shape_cast %258 : vector<16x32xf32> to vector<2x8x32xf32>
    %260 = arith.truncf %243 : vector<2x8x32xf32> to vector<2x8x32xbf16>
    %261 = arith.truncf %251 : vector<2x8x32xf32> to vector<2x8x32xbf16>
    "tpu.trace_start"() <{level = 10 : i32, message = "bnd,bmd->bnm"}> : () -> ()
    %cst_168 = arith.constant dense<0.000000e+00> : vector<2x8x8xf32>
    %262 = tpu.matmul %260, %261, %cst_168 {dimension_numbers = #tpu.dot_dimension_numbers<[2], [2], [1], [1], [0, 0, 0, 1, 1, 1], [0], [0]>} : vector<2x8x32xbf16>, vector<2x8x32xbf16>, vector<2x8x8xf32> -> vector<2x8x8xf32>
    %cst_169 = arith.constant -1.000000e+30 : f32
    "tpu.trace_stop"() : () -> ()
    %263 = vector.shape_cast %11 : vector<1x1x8xi1> to vector<1x1x8xi1>
    %264 = vector.broadcast %263 : vector<1x1x8xi1> to vector<2x8x8xi1>
    %265 = vector.broadcast %cst_169 : f32 to vector<2x8x8xf32>
    %266 = arith.select %264, %262, %265 : vector<2x8x8xi1>, vector<2x8x8xf32>
    %cst_170 = arith.constant dense<0xFF800000> : vector<2x8xf32>
    %267 = vector.multi_reduction <maximumf>, %266, %cst_170 [2] : vector<2x8x8xf32> to vector<2x8xf32>
    %268 = vector.shape_cast %267 : vector<2x8xf32> to vector<2x8x1xf32>
    %269 = vector.broadcast %268 : vector<2x8x1xf32> to vector<2x8x8xf32>
    %270 = arith.subf %266, %269 : vector<2x8x8xf32>
    %271 = math.exp %270 : vector<2x8x8xf32>
    %cst_171 = arith.constant dense<0.000000e+00> : vector<2x8xf32>
    %272 = vector.multi_reduction <add>, %271, %cst_171 [2] : vector<2x8x8xf32> to vector<2x8xf32>
    %273 = vector.shape_cast %272 : vector<2x8xf32> to vector<2x8x1xf32>
    %274 = tpu.reciprocal %273 {approx = true} : vector<2x8x1xf32> -> vector<2x8x1xf32>
    %275 = vector.broadcast %274 : vector<2x8x1xf32> to vector<2x8x8xf32>
    %276 = arith.mulf %271, %275 : vector<2x8x8xf32>
    %277 = arith.truncf %276 : vector<2x8x8xf32> to vector<2x8x8xbf16>
    %278 = arith.truncf %259 : vector<2x8x32xf32> to vector<2x8x32xbf16>
    "tpu.trace_start"() <{level = 10 : i32, message = "bnm,bmd->bnd"}> : () -> ()
    %cst_172 = arith.constant dense<0.000000e+00> : vector<2x8x32xf32>
    %279 = tpu.matmul %277, %278, %cst_172 {dimension_numbers = #tpu.dot_dimension_numbers<[2], [1], [1], [2], [0, 0, 0, 1, 1, 2], [0], [0]>} : vector<2x8x8xbf16>, vector<2x8x32xbf16>, vector<2x8x32xf32> -> vector<2x8x32xf32>
    "tpu.trace_stop"() : () -> ()
    %280 = vector.shape_cast %279 : vector<2x8x32xf32> to vector<16x32xf32>
    %281 = arith.truncf %280 : vector<16x32xf32> to vector<16x32xbf16>
    %c1_173 = arith.constant 1 : index
    %c0_174 = arith.constant 0 : index
    %c0_175 = arith.constant 0 : index
    %c0_176 = arith.constant 0 : index
    %282 = vector.load %arg11[%c1_173, %c0_174, %c0_175, %c0_176] : memref<2x2x32x64xbf16, #tpu.memory_space<vmem>>, vector<1x1x32x64xbf16>
    %283 = vector.shape_cast %282 : vector<1x1x32x64xbf16> to vector<32x64xbf16>
    %cst_177 = arith.constant dense<0.000000e+00> : vector<16x64xf32>
    %284 = tpu.matmul %281, %283, %cst_177 {dimension_numbers = #tpu.dot_dimension_numbers<[1], [0], [0], [1], [0, 0, 1, 1], [], []>} : vector<16x32xbf16>, vector<32x64xbf16>, vector<16x64xf32> -> vector<16x64xf32>
    %285 = vector.broadcast %235 : vector<1x64xf32> to vector<16x64xf32>
    %286 = arith.addf %285, %284 : vector<16x64xf32>
    %c1_178 = arith.constant 1 : index
    %c1_179 = arith.constant 1 : index
    %c0_180 = arith.constant 0 : index
    %c0_181 = arith.constant 0 : index
    %287 = vector.load %arg5[%c1_178, %c1_179, %c0_180, %c0_181] : memref<2x2x64x32xbf16, #tpu.memory_space<vmem>>, vector<1x1x64x32xbf16>
    %288 = vector.shape_cast %287 : vector<1x1x64x32xbf16> to vector<64x32xbf16>
    %cst_182 = arith.constant dense<0.000000e+00> : vector<16x32xf32>
    %289 = tpu.matmul %233, %288, %cst_182 {dimension_numbers = #tpu.dot_dimension_numbers<[1], [0], [0], [1], [0, 0, 1, 1], [], []>} : vector<16x64xbf16>, vector<64x32xbf16>, vector<16x32xf32> -> vector<16x32xf32>
    %c1_183 = arith.constant 1 : index
    %c1_184 = arith.constant 1 : index
    %c0_185 = arith.constant 0 : index
    %c0_186 = arith.constant 0 : index
    %290 = vector.load %arg8[%c1_183, %c1_184, %c0_185, %c0_186] : memref<2x2x1x32xf32, #tpu.memory_space<vmem>>, vector<1x1x1x32xf32>
    %291 = vector.shape_cast %290 : vector<1x1x1x32xf32> to vector<1x32xf32>
    %292 = vector.broadcast %291 : vector<1x32xf32> to vector<16x32xf32>
    %293 = arith.addf %289, %292 : vector<16x32xf32>
    %294 = vector.shape_cast %293 : vector<16x32xf32> to vector<2x8x32xf32>
    %c1_187 = arith.constant 1 : index
    %c1_188 = arith.constant 1 : index
    %c0_189 = arith.constant 0 : index
    %c0_190 = arith.constant 0 : index
    %295 = vector.load %arg6[%c1_187, %c1_188, %c0_189, %c0_190] : memref<2x2x64x32xbf16, #tpu.memory_space<vmem>>, vector<1x1x64x32xbf16>
    %296 = vector.shape_cast %295 : vector<1x1x64x32xbf16> to vector<64x32xbf16>
    %cst_191 = arith.constant dense<0.000000e+00> : vector<16x32xf32>
    %297 = tpu.matmul %233, %296, %cst_191 {dimension_numbers = #tpu.dot_dimension_numbers<[1], [0], [0], [1], [0, 0, 1, 1], [], []>} : vector<16x64xbf16>, vector<64x32xbf16>, vector<16x32xf32> -> vector<16x32xf32>
    %c1_192 = arith.constant 1 : index
    %c1_193 = arith.constant 1 : index
    %c0_194 = arith.constant 0 : index
    %c0_195 = arith.constant 0 : index
    %298 = vector.load %arg9[%c1_192, %c1_193, %c0_194, %c0_195] : memref<2x2x1x32xf32, #tpu.memory_space<vmem>>, vector<1x1x1x32xf32>
    %299 = vector.shape_cast %298 : vector<1x1x1x32xf32> to vector<1x32xf32>
    %300 = vector.broadcast %299 : vector<1x32xf32> to vector<16x32xf32>
    %301 = arith.addf %297, %300 : vector<16x32xf32>
    %302 = vector.shape_cast %301 : vector<16x32xf32> to vector<2x8x32xf32>
    %c1_196 = arith.constant 1 : index
    %c1_197 = arith.constant 1 : index
    %c0_198 = arith.constant 0 : index
    %c0_199 = arith.constant 0 : index
    %303 = vector.load %arg7[%c1_196, %c1_197, %c0_198, %c0_199] : memref<2x2x64x32xbf16, #tpu.memory_space<vmem>>, vector<1x1x64x32xbf16>
    %304 = vector.shape_cast %303 : vector<1x1x64x32xbf16> to vector<64x32xbf16>
    %cst_200 = arith.constant dense<0.000000e+00> : vector<16x32xf32>
    %305 = tpu.matmul %233, %304, %cst_200 {dimension_numbers = #tpu.dot_dimension_numbers<[1], [0], [0], [1], [0, 0, 1, 1], [], []>} : vector<16x64xbf16>, vector<64x32xbf16>, vector<16x32xf32> -> vector<16x32xf32>
    %c1_201 = arith.constant 1 : index
    %c1_202 = arith.constant 1 : index
    %c0_203 = arith.constant 0 : index
    %c0_204 = arith.constant 0 : index
    %306 = vector.load %arg10[%c1_201, %c1_202, %c0_203, %c0_204] : memref<2x2x1x32xf32, #tpu.memory_space<vmem>>, vector<1x1x1x32xf32>
    %307 = vector.shape_cast %306 : vector<1x1x1x32xf32> to vector<1x32xf32>
    %308 = vector.broadcast %307 : vector<1x32xf32> to vector<16x32xf32>
    %309 = arith.addf %305, %308 : vector<16x32xf32>
    %310 = vector.shape_cast %309 : vector<16x32xf32> to vector<2x8x32xf32>
    %311 = arith.truncf %294 : vector<2x8x32xf32> to vector<2x8x32xbf16>
    %312 = arith.truncf %302 : vector<2x8x32xf32> to vector<2x8x32xbf16>
    "tpu.trace_start"() <{level = 10 : i32, message = "bnd,bmd->bnm"}> : () -> ()
    %cst_205 = arith.constant dense<0.000000e+00> : vector<2x8x8xf32>
    %313 = tpu.matmul %311, %312, %cst_205 {dimension_numbers = #tpu.dot_dimension_numbers<[2], [2], [1], [1], [0, 0, 0, 1, 1, 1], [0], [0]>} : vector<2x8x32xbf16>, vector<2x8x32xbf16>, vector<2x8x8xf32> -> vector<2x8x8xf32>
    %cst_206 = arith.constant -1.000000e+30 : f32
    "tpu.trace_stop"() : () -> ()
    %314 = vector.shape_cast %11 : vector<1x1x8xi1> to vector<1x1x8xi1>
    %315 = vector.broadcast %314 : vector<1x1x8xi1> to vector<2x8x8xi1>
    %316 = vector.broadcast %cst_206 : f32 to vector<2x8x8xf32>
    %317 = arith.select %315, %313, %316 : vector<2x8x8xi1>, vector<2x8x8xf32>
    %cst_207 = arith.constant dense<0xFF800000> : vector<2x8xf32>
    %318 = vector.multi_reduction <maximumf>, %317, %cst_207 [2] : vector<2x8x8xf32> to vector<2x8xf32>
    %319 = vector.shape_cast %318 : vector<2x8xf32> to vector<2x8x1xf32>
    %320 = vector.broadcast %319 : vector<2x8x1xf32> to vector<2x8x8xf32>
    %321 = arith.subf %317, %320 : vector<2x8x8xf32>
    %322 = math.exp %321 : vector<2x8x8xf32>
    %cst_208 = arith.constant dense<0.000000e+00> : vector<2x8xf32>
    %323 = vector.multi_reduction <add>, %322, %cst_208 [2] : vector<2x8x8xf32> to vector<2x8xf32>
    %324 = vector.shape_cast %323 : vector<2x8xf32> to vector<2x8x1xf32>
    %325 = tpu.reciprocal %324 {approx = true} : vector<2x8x1xf32> -> vector<2x8x1xf32>
    %326 = vector.broadcast %325 : vector<2x8x1xf32> to vector<2x8x8xf32>
    %327 = arith.mulf %322, %326 : vector<2x8x8xf32>
    %328 = arith.truncf %327 : vector<2x8x8xf32> to vector<2x8x8xbf16>
    %329 = arith.truncf %310 : vector<2x8x32xf32> to vector<2x8x32xbf16>
    "tpu.trace_start"() <{level = 10 : i32, message = "bnm,bmd->bnd"}> : () -> ()
    %cst_209 = arith.constant dense<0.000000e+00> : vector<2x8x32xf32>
    %330 = tpu.matmul %328, %329, %cst_209 {dimension_numbers = #tpu.dot_dimension_numbers<[2], [1], [1], [2], [0, 0, 0, 1, 1, 2], [0], [0]>} : vector<2x8x8xbf16>, vector<2x8x32xbf16>, vector<2x8x32xf32> -> vector<2x8x32xf32>
    "tpu.trace_stop"() : () -> ()
    %331 = vector.shape_cast %330 : vector<2x8x32xf32> to vector<16x32xf32>
    %332 = arith.truncf %331 : vector<16x32xf32> to vector<16x32xbf16>
    %c1_210 = arith.constant 1 : index
    %c1_211 = arith.constant 1 : index
    %c0_212 = arith.constant 0 : index
    %c0_213 = arith.constant 0 : index
    %333 = vector.load %arg11[%c1_210, %c1_211, %c0_212, %c0_213] : memref<2x2x32x64xbf16, #tpu.memory_space<vmem>>, vector<1x1x32x64xbf16>
    %334 = vector.shape_cast %333 : vector<1x1x32x64xbf16> to vector<32x64xbf16>
    %cst_214 = arith.constant dense<0.000000e+00> : vector<16x64xf32>
    %335 = tpu.matmul %332, %334, %cst_214 {dimension_numbers = #tpu.dot_dimension_numbers<[1], [0], [0], [1], [0, 0, 1, 1], [], []>} : vector<16x32xbf16>, vector<32x64xbf16>, vector<16x64xf32> -> vector<16x64xf32>
    %336 = arith.addf %286, %335 : vector<16x64xf32>
    %c1_215 = arith.constant 1 : index
    %c0_216 = arith.constant 0 : index
    %c0_217 = arith.constant 0 : index
    %337 = vector.load %arg13[%c1_215, %c0_216, %c0_217] : memref<2x1x64xf32, #tpu.memory_space<vmem>>, vector<1x1x64xf32>
    %338 = vector.shape_cast %337 : vector<1x1x64xf32> to vector<1x64xf32>
    %339 = vector.broadcast %338 : vector<1x64xf32> to vector<16x64xf32>
    %340 = arith.mulf %339, %336 : vector<16x64xf32>
    %341 = arith.addf %206, %340 : vector<16x64xf32>
    %c1_218 = arith.constant 1 : index
    %c0_219 = arith.constant 0 : index
    %c0_220 = arith.constant 0 : index
    %342 = vector.load %arg14[%c1_218, %c0_219, %c0_220] : memref<2x1x64xf32, #tpu.memory_space<vmem>>, vector<1x1x64xf32>
    %343 = vector.shape_cast %342 : vector<1x1x64xf32> to vector<1x64xf32>
    %c1_221 = arith.constant 1 : index
    %c0_222 = arith.constant 0 : index
    %c0_223 = arith.constant 0 : index
    %344 = vector.load %arg15[%c1_221, %c0_222, %c0_223] : memref<2x1x64xf32, #tpu.memory_space<vmem>>, vector<1x1x64xf32>
    %345 = vector.shape_cast %344 : vector<1x1x64xf32> to vector<1x64xf32>
    %cst_224 = arith.constant dense<0.000000e+00> : vector<16xf32>
    %346 = vector.multi_reduction <add>, %341, %cst_224 [1] : vector<16x64xf32> to vector<16xf32>
    %347 = vector.shape_cast %346 : vector<16xf32> to vector<16x1xf32>
    %cst_225 = arith.constant 6.400000e+01 : f32
    %348 = vector.broadcast %cst_225 : f32 to vector<16x1xf32>
    %349 = arith.divf %347, %348 : vector<16x1xf32>
    %350 = vector.broadcast %349 : vector<16x1xf32> to vector<16x64xf32>
    %351 = arith.subf %341, %350 : vector<16x64xf32>
    %352 = arith.mulf %351, %351 : vector<16x64xf32>
    %cst_226 = arith.constant dense<0.000000e+00> : vector<16xf32>
    %353 = vector.multi_reduction <add>, %352, %cst_226 [1] : vector<16x64xf32> to vector<16xf32>
    %354 = vector.shape_cast %353 : vector<16xf32> to vector<16x1xf32>
    %cst_227 = arith.constant 6.400000e+01 : f32
    %355 = vector.broadcast %cst_227 : f32 to vector<16x1xf32>
    %356 = arith.divf %354, %355 : vector<16x1xf32>
    %357 = vector.broadcast %349 : vector<16x1xf32> to vector<16x64xf32>
    %358 = arith.subf %341, %357 : vector<16x64xf32>
    %cst_228 = arith.constant 9.99999997E-7 : f32
    %359 = vector.broadcast %cst_228 : f32 to vector<16x1xf32>
    %360 = arith.addf %356, %359 : vector<16x1xf32>
    %361 = math.rsqrt %360 : vector<16x1xf32>
    %362 = vector.broadcast %361 : vector<16x1xf32> to vector<16x64xf32>
    %363 = arith.mulf %358, %362 : vector<16x64xf32>
    %364 = vector.broadcast %343 : vector<1x64xf32> to vector<16x64xf32>
    %365 = arith.mulf %363, %364 : vector<16x64xf32>
    %366 = vector.broadcast %345 : vector<1x64xf32> to vector<16x64xf32>
    %367 = arith.addf %365, %366 : vector<16x64xf32>
    %368 = arith.truncf %367 : vector<16x64xf32> to vector<16x64xbf16>
    %c1_229 = arith.constant 1 : index
    %c0_230 = arith.constant 0 : index
    %c0_231 = arith.constant 0 : index
    %369 = vector.load %arg16[%c1_229, %c0_230, %c0_231] : memref<2x64x256xbf16, #tpu.memory_space<vmem>>, vector<1x64x256xbf16>
    %370 = vector.shape_cast %369 : vector<1x64x256xbf16> to vector<64x256xbf16>
    %cst_232 = arith.constant dense<0.000000e+00> : vector<16x256xf32>
    %371 = tpu.matmul %368, %370, %cst_232 {dimension_numbers = #tpu.dot_dimension_numbers<[1], [0], [0], [1], [0, 0, 1, 1], [], []>} : vector<16x64xbf16>, vector<64x256xbf16>, vector<16x256xf32> -> vector<16x256xf32>
    %c1_233 = arith.constant 1 : index
    %c0_234 = arith.constant 0 : index
    %c0_235 = arith.constant 0 : index
    %372 = vector.load %arg17[%c1_233, %c0_234, %c0_235] : memref<2x1x256xf32, #tpu.memory_space<vmem>>, vector<1x1x256xf32>
    %373 = vector.shape_cast %372 : vector<1x1x256xf32> to vector<1x256xf32>
    %374 = vector.broadcast %373 : vector<1x256xf32> to vector<16x256xf32>
    %375 = arith.addf %371, %374 : vector<16x256xf32>
    %376 = arith.mulf %375, %375 : vector<16x256xf32>
    %377 = arith.mulf %375, %376 : vector<16x256xf32>
    %cst_236 = arith.constant 4.471500e-02 : f32
    %378 = vector.broadcast %cst_236 : f32 to vector<16x256xf32>
    %379 = arith.mulf %378, %377 : vector<16x256xf32>
    %380 = arith.addf %375, %379 : vector<16x256xf32>
    %cst_237 = arith.constant 0.797884583 : f32
    %381 = vector.broadcast %cst_237 : f32 to vector<16x256xf32>
    %382 = arith.mulf %381, %380 : vector<16x256xf32>
    %383 = math.tanh %382 : vector<16x256xf32>
    %cst_238 = arith.constant 1.000000e+00 : f32
    %384 = vector.broadcast %cst_238 : f32 to vector<16x256xf32>
    %385 = arith.addf %384, %383 : vector<16x256xf32>
    %cst_239 = arith.constant 5.000000e-01 : f32
    %386 = vector.broadcast %cst_239 : f32 to vector<16x256xf32>
    %387 = arith.mulf %386, %385 : vector<16x256xf32>
    %388 = arith.mulf %375, %387 : vector<16x256xf32>
    %389 = arith.truncf %388 : vector<16x256xf32> to vector<16x256xbf16>
    %c1_240 = arith.constant 1 : index
    %c0_241 = arith.constant 0 : index
    %c0_242 = arith.constant 0 : index
    %390 = vector.load %arg18[%c1_240, %c0_241, %c0_242] : memref<2x256x64xbf16, #tpu.memory_space<vmem>>, vector<1x256x64xbf16>
    %391 = vector.shape_cast %390 : vector<1x256x64xbf16> to vector<256x64xbf16>
    %cst_243 = arith.constant dense<0.000000e+00> : vector<16x64xf32>
    %392 = tpu.matmul %389, %391, %cst_243 {dimension_numbers = #tpu.dot_dimension_numbers<[1], [0], [0], [1], [0, 0, 1, 1], [], []>} : vector<16x256xbf16>, vector<256x64xbf16>, vector<16x64xf32> -> vector<16x64xf32>
    %c1_244 = arith.constant 1 : index
    %c0_245 = arith.constant 0 : index
    %c0_246 = arith.constant 0 : index
    %393 = vector.load %arg19[%c1_244, %c0_245, %c0_246] : memref<2x1x64xf32, #tpu.memory_space<vmem>>, vector<1x1x64xf32>
    %394 = vector.shape_cast %393 : vector<1x1x64xf32> to vector<1x64xf32>
    %395 = vector.broadcast %394 : vector<1x64xf32> to vector<16x64xf32>
    %396 = arith.addf %392, %395 : vector<16x64xf32>
    %c1_247 = arith.constant 1 : index
    %c0_248 = arith.constant 0 : index
    %c0_249 = arith.constant 0 : index
    %397 = vector.load %arg20[%c1_247, %c0_248, %c0_249] : memref<2x1x64xf32, #tpu.memory_space<vmem>>, vector<1x1x64xf32>
    %398 = vector.shape_cast %397 : vector<1x1x64xf32> to vector<1x64xf32>
    %399 = vector.broadcast %398 : vector<1x64xf32> to vector<16x64xf32>
    %400 = arith.mulf %399, %396 : vector<16x64xf32>
    %401 = arith.addf %341, %400 : vector<16x64xf32>
    %c0_250 = arith.constant 0 : index
    %c0_251 = arith.constant 0 : index
    %402 = vector.load %arg21[%c0_250, %c0_251] : memref<1x64xf32, #tpu.memory_space<vmem>>, vector<1x64xf32>
    %c0_252 = arith.constant 0 : index
    %c0_253 = arith.constant 0 : index
    %403 = vector.load %arg22[%c0_252, %c0_253] : memref<1x64xf32, #tpu.memory_space<vmem>>, vector<1x64xf32>
    %cst_254 = arith.constant dense<0.000000e+00> : vector<16xf32>
    %404 = vector.multi_reduction <add>, %401, %cst_254 [1] : vector<16x64xf32> to vector<16xf32>
    %405 = vector.shape_cast %404 : vector<16xf32> to vector<16x1xf32>
    %cst_255 = arith.constant 6.400000e+01 : f32
    %406 = vector.broadcast %cst_255 : f32 to vector<16x1xf32>
    %407 = arith.divf %405, %406 : vector<16x1xf32>
    %408 = vector.broadcast %407 : vector<16x1xf32> to vector<16x64xf32>
    %409 = arith.subf %401, %408 : vector<16x64xf32>
    %410 = arith.mulf %409, %409 : vector<16x64xf32>
    %cst_256 = arith.constant dense<0.000000e+00> : vector<16xf32>
    %411 = vector.multi_reduction <add>, %410, %cst_256 [1] : vector<16x64xf32> to vector<16xf32>
    %412 = vector.shape_cast %411 : vector<16xf32> to vector<16x1xf32>
    %cst_257 = arith.constant 6.400000e+01 : f32
    %413 = vector.broadcast %cst_257 : f32 to vector<16x1xf32>
    %414 = arith.divf %412, %413 : vector<16x1xf32>
    %415 = vector.broadcast %407 : vector<16x1xf32> to vector<16x64xf32>
    %416 = arith.subf %401, %415 : vector<16x64xf32>
    %cst_258 = arith.constant 9.99999997E-7 : f32
    %417 = vector.broadcast %cst_258 : f32 to vector<16x1xf32>
    %418 = arith.addf %414, %417 : vector<16x1xf32>
    %419 = math.rsqrt %418 : vector<16x1xf32>
    %420 = vector.broadcast %419 : vector<16x1xf32> to vector<16x64xf32>
    %421 = arith.mulf %416, %420 : vector<16x64xf32>
    %422 = vector.broadcast %402 : vector<1x64xf32> to vector<16x64xf32>
    %423 = arith.mulf %421, %422 : vector<16x64xf32>
    %424 = vector.broadcast %403 : vector<1x64xf32> to vector<16x64xf32>
    %425 = arith.addf %423, %424 : vector<16x64xf32>
    %cst_259 = arith.constant 0.000000e+00 : f32
    %426 = vector.broadcast %cst_259 : f32 to vector<16x64xf32>
    %427 = tpu.concatenate %425, %426 in 1 : vector<16x64xf32>, vector<16x64xf32> -> vector<16x128xf32>
    %c0_260 = arith.constant 0 : index
    %c0_261 = arith.constant 0 : index
    %428 = vector.load %arg23[%c0_260, %c0_261] : memref<16x128xf32, #tpu.memory_space<vmem>>, vector<16x128xf32>
    tpu.vector_store %arg23[%c0_260, %c0_261], %427 {strides = array<i32>} : memref<16x128xf32, #tpu.memory_space<vmem>>, vector<16x128xf32>,
    return
  }
}

</mosaic_0001>

<bundles_post_ra>
// kernel: custom_dinov2_forward.1
= control target key start
LH: loop header
LB: loop body
LE: loop exit
PB: predicated region body
PF: predicated region fallthrough
CT: control target
= control target key end

     0   :  { %vm405_vm0 = vcmask 1045504   ;;  %vm401_vm1 = vcmask 621568   ;;  %vm487_vm2 = vcmask 523264   ;;  %vm708_vm10 = vcmask 261120   ;;  %s4567_s1 = inlined_call_operand.vmem [shape: bf16[588,64], index: 1, kind: input, shape index: {}]   ;;  %s4568_s0 = inlined_call_operand.vmem [shape: bf16[16,588], index: 0, kind: input, shape index: {}]   ;;  %s4569_s2 = inlined_call_operand.vmem [shape: f32[8,64], index: 2, kind: input, shape index: {}]   ;;  %s4570_s3 = inlined_call_operand.vmem [shape: f32[2,1,64], index: 3, kind: input, shape index: {}]   ;;  %s4571_s4 = inlined_call_operand.vmem [shape: f32[2,1,64], index: 4, kind: input, shape index: {}]   ;;  %s4572_s8 = inlined_call_operand.vmem [shape: f32[2,2,1,32], index: 8, kind: input, shape index: {}]   ;;  %s4573_s5 = inlined_call_operand.vmem [shape: bf16[2,2,64,32], index: 5, kind: input, shape index: {}]   ;;  %s4574_s6 = inlined_call_operand.vmem [shape: bf16[2,2,64,32], index: 6, kind: input, shape index: {}]   ;;  %s4575_s7 = inlined_call_operand.vmem [shape: bf16[2,2,64,32], index: 7, kind: input, shape index: {}]   ;;  %s4576_s9 = inlined_call_operand.vmem [shape: f32[2,2,1,32], index: 9, kind: input, shape index: {}]   ;;  %s4577_s10 = inlined_call_operand.vmem [shape: f32[2,2,1,32], index: 10, kind: input, shape index: {}]   ;;  %s4578_s12 = inlined_call_operand.vmem [shape: f32[2,1,64], index: 12, kind: input, shape index: {}]   ;;  %s4579_s11 = inlined_call_operand.vmem [shape: bf16[2,2,32,64], index: 11, kind: input, shape index: {}]   ;;  %s4580_s13 = inlined_call_operand.vmem [shape: f32[2,1,64], index: 13, kind: input, shape index: {}]   ;;  %s4581_s14 = inlined_call_operand.vmem [shape: f32[2,1,64], index: 14, kind: input, shape index: {}]   ;;  %s4582_s15 = inlined_call_operand.vmem [shape: f32[2,1,64], index: 15, kind: input, shape index: {}]   ;;  %s4583_s16 = inlined_call_operand.vmem [shape: bf16[2,64,256], index: 16, kind: input, shape index: {}]   ;;  %s4584_s19 = inlined_call_operand.vmem [shape: f32[2,1,64], index: 19, kind: input, shape index: {}]   ;;  %s4585_s18 = inlined_call_operand.vmem [shape: bf16[2,256,64], index: 18, kind: input, shape index: {}]   ;;  %s4586_s17 = inlined_call_operand.vmem [shape: f32[2,1,256], index: 17, kind: input, shape index: {}]   ;;  %s4587_s20 = inlined_call_operand.vmem [shape: f32[2,1,64], index: 20, kind: input, shape index: {}]   ;;  %s4588_s21 = inlined_call_operand.vmem [shape: f32[1,64], index: 21, kind: input, shape index: {}]   ;;  %s4589_s22 = inlined_call_operand.vmem [shape: f32[1,64], index: 22, kind: input, shape index: {}]   ;;  %s4590_s23 = inlined_call_operand.vmem [shape: f32[16,128], index: 23, kind: output, shape index: {}]  }
   0x1   :  { %4598 = sst [smem:[#allocation2_spill]] %s4567_s1  ;;  %vm781_vm11 = vcmask 1043456   ;;  %vm751_vm13 = vcmask 64512  }
   0x2   :  { %4599 = sst [smem:[#allocation3_spill]] %s4568_s0 }
   0x3   :  { %4600 = sst [smem:[#allocation4_spill]] %s4569_s2 }
   0x4   :  { %4601 = sst [smem:[#allocation5_spill]] %s4570_s3 }
   0x5   :  { %4602 = sst [smem:[#allocation6_spill]] %s4571_s4 }
   0x6   :  { %4603 = sst [smem:[#allocation7_spill]] %s4572_s8 }
   0x7   :  { %4604 = sst [smem:[#allocation8_spill]] %s4573_s5 }
   0x8   :  { %4605 = sst [smem:[#allocation9_spill]] %s4574_s6 }
   0x9   :  { %s4606_s24 = sld [smem:[#allocation2_spill]] }
   0xa   :  { %s4607_s4 = sld [smem:[#allocation3_spill]] }
   0xb   :  { %s4608_s25 = sld [smem:[#allocation4_spill]] }
   0xc   :  { %s4609_s0 = sld [smem:[#allocation8_spill]] }
   0xd   :  { %s4610_s5 = sld [smem:[#allocation9_spill]] }
   0xe   :  { %s4612_s2 = sld [smem:[#allocation6_spill]] }
   0xf   :  { %v3385_v0 = vld [vmem:[%s4606_s24 + $0x38] sm:$0xff]  ;;  %v3384_v4 = vld [vmem:[%s4606_s24 + $0x30] sm:$0xff]  ;;  %v3383_v8 = vld [vmem:[%s4606_s24 + $0x28] sm:$0xff]  ;;  %s4613_s3 = sld [smem:[#allocation7_spill]] }
  0x10   :  { %v3393_v1 = vld [vmem:[%s4606_s24 + $0x78] sm:$0xff]  ;;  %409 = vmatpush.bf16.msra.mxu0 %v3385_v0  ;;  %v3392_v5 = vld [vmem:[%s4606_s24 + $0x70] sm:$0xff]  ;;  %v3391_v9 = vld [vmem:[%s4606_s24 + $0x68] sm:$0xff] }
  0x11   :  { %v3401_v2 = vld [vmem:[%s4606_s24 + $0xb8] sm:$0xff]  ;;  %423 = vmatpush.bf16.msra.mxu1 %v3393_v1  ;;  %v3400_v6 = vld [vmem:[%s4606_s24 + $0xb0] sm:$0xff]  ;;  %v3399_v10 = vld [vmem:[%s4606_s24 + $0xa8] sm:$0xff] }
  0x12   :  { %v3409_v3 = vld [vmem:[%s4606_s24 + $0xf8] sm:$0xff]  ;;  %437 = vmatpush.bf16.msra.mxu2 %v3401_v2  ;;  %v3408_v7 = vld [vmem:[%s4606_s24 + $0xf0] sm:$0xff]  ;;  %v3407_v11 = vld [vmem:[%s4606_s24 + $0xe8] sm:$0xff] }
  0x13   :  { %451 = vmatpush.bf16.msra.mxu3 %v3409_v3  ;;  %v3382_v12 = vld [vmem:[%s4606_s24 + $0x20] sm:$0xff]  ;;  %v3381_v16 = vld [vmem:[%s4606_s24 + $0x18] sm:$0xff]  ;;  %v3380_v20 = vld [vmem:[%s4606_s24 + $0x10] sm:$0xff] }
  0x14   :  { %410 = vmatpush.bf16.msra.mxu0 %v3384_v4  ;;  %v3390_v13 = vld [vmem:[%s4606_s24 + $0x60] sm:$0xff]  ;;  %v3389_v17 = vld [vmem:[%s4606_s24 + $0x58] sm:$0xff]  ;;  %v3388_v21 = vld [vmem:[%s4606_s24 + $0x50] sm:$0xff] }
  0x15   :  { %424 = vmatpush.bf16.msra.mxu1 %v3392_v5  ;;  %v3398_v14 = vld [vmem:[%s4606_s24 + $0xa0] sm:$0xff]  ;;  %v3397_v18 = vld [vmem:[%s4606_s24 + $0x98] sm:$0xff]  ;;  %v3396_v22 = vld [vmem:[%s4606_s24 + $0x90] sm:$0xff] }
  0x16   :  { %438 = vmatpush.bf16.msra.mxu2 %v3400_v6  ;;  %v3406_v15 = vld [vmem:[%s4606_s24 + $0xe0] sm:$0xff]  ;;  %v3405_v19 = vld [vmem:[%s4606_s24 + $0xd8] sm:$0xff]  ;;  %v3404_v23 = vld [vmem:[%s4606_s24 + $0xd0] sm:$0xff] }
  0x17   :  { %452 = vmatpush.bf16.msra.mxu3 %v3408_v7  ;;  %v3379_v24 = vld [vmem:[%s4606_s24 + $0x8] sm:$0xff]  ;;  %v2776_v26 = vld [vmem:[%s4606_s24 + $0x120] sm:$0xf]  ;;  %v3414_v27 = vld [vmem:[%s4606_s24 + $0x120] sm:$0x30] }
  0x18   :  { %411 = vmatpush.bf16.msra.mxu0 %v3383_v8  ;;  %v3387_v25 = vld [vmem:[%s4606_s24 + $0x48] sm:$0xff]  ;;  %v3378_v30 = vld [vmem:[%s4606_s24] sm:$0xff]  ;;  %v2777_v34 = vor.u32 %v3414_v27, %v2776_v26  ;;  %v3375_v36 = vld [vmem:[%s4607_s4 + $0x10] sm:$0xf0] }
  0x19   :  { %425 = vmatpush.bf16.msra.mxu1 %v3391_v9  ;;  %v3395_v28 = vld [vmem:[%s4606_s24 + $0x88] sm:$0xff]  ;;  %v3386_v31 = vld [vmem:[%s4606_s24 + $0x40] sm:$0xff]  ;;  %v2614_v38 = vld [vmem:[%s4607_s4 + $0x14] sm:$0xf0] }
  0x1a   :  { %439 = vmatpush.bf16.msra.mxu2 %v3399_v10  ;;  %v3403_v29 = vld [vmem:[%s4606_s24 + $0xc8] sm:$0xff]  ;;  %v3394_v32 = vld [vmem:[%s4606_s24 + $0x80] sm:$0xff]  ;;  %v3376_v40 = vld [vmem:[%s4607_s4 + $0x18] sm:$0xf0]  ;;  %v407_v43 = vsel %vm405_vm0, %v2777_v34, 0 }
  0x1b   :  { %453 = vmatpush.bf16.msra.mxu3 %v3407_v11  ;;  %v3402_v33 = vld [vmem:[%s4606_s24 + $0xc0] sm:$0xff]  ;;  %v2620_v39 = vld [vmem:[%s4607_s4 + $0x8] sm:$0xf]  ;;  %v3374_v41 = vld [vmem:[%s4607_s4 + $0xc] sm:$0xf] }
  0x1c   :  { %412 = vmatpush.bf16.msra.mxu0 %v3382_v12  ;;  %v2612_v35 = vld [vmem:[%s4607_s4] sm:$0xf]  ;;  %v3373_v37 = vld [vmem:[%s4607_s4 + $0x4] sm:$0xf]  ;;  %v2621_v46 = vor.u32 %v3376_v40, %v2620_v39  ;;  %v3413_v48 = vld [vmem:[%s4606_s24 + $0x118] sm:$0xff] }
  0x1d   :  { %426 = vmatpush.bf16.msra.mxu1 %v3390_v13  ;;  %v2622_v42 = vld [vmem:[%s4607_s4 + $0x1c] sm:$0xf0]  ;;  %v2613_v44 = vor.u32 %v3375_v36, %v2612_v35  ;;  %v2617_v45 = vor.u32 %v3373_v37, %v2614_v38  ;;  %v3412_v49 = vld [vmem:[%s4606_s24 + $0x110] sm:$0xff]  ;;  %v3411_v50 = vld [vmem:[%s4606_s24 + $0x108] sm:$0xff] }
  0x1e   :  { %440 = vmatpush.bf16.msra.mxu2 %v3398_v14  ;;  %v2625_v47 = vor.u32 %v3374_v41, %v2622_v42  ;;  %v3410_v51 = vld [vmem:[%s4606_s24 + $0x100] sm:$0xff]  ;;  %v2628_v52 = vld [vmem:[%s4607_s4 + $0x10] sm:$0xf]  ;;  %v3620_v14 = vmov 64.0   ;;  %v3416_v37 = vld [vmem:[%s4609_s0 + $0x8] sm:$0xff] }
  0x1f   :  { %454 = vmatpush.bf16.msra.mxu3 %v3406_v15  ;;  %v3377_v53 = vld [vmem:[%s4607_s4 + $0x20] sm:$0xf0]  ;;  %3550 = vrcp.f32 %v3620_v14  ;;  %v3417_v34 = vld [vmem:[%s4609_s0 + $0x10] sm:$0xff]  ;;  %v3420_v38 = vld [vmem:[%s4610_s5 + $0x8] sm:$0xff]  ;;  %s4611_s4 = sld [smem:[#allocation5_spill]] }
  0x20   :  { %413 = vmatpush.bf16.msra.mxu0 %v3381_v16  ;;  %v2629_v54 = vor.u32 %v3377_v53, %v2628_v52  ;;  %v479_v2 = vld [vmem:[%s4608_s25] sm:$0xff]  ;;  %v3421_v35 = vld [vmem:[%s4610_s5 + $0x10] sm:$0xff]  ;;  %v3424_v39 = vld [vmem:[%s4575_s7 + $0x8] sm:$0xff] }
  0x21   :  { %427 = vmatpush.bf16.msra.mxu1 %v3389_v17  ;;  %v3425_v36 = vld [vmem:[%s4575_s7 + $0x10] sm:$0xff]  ;;  %v3415_v42 = vld [vmem:[%s4609_s0] sm:$0xff] }
  0x22   :  { %441 = vmatpush.bf16.msra.mxu2 %v3397_v18  ;;  %v3522_v14 = vld [vmem:[%s4613_s3] ss:$0 sm:$0xff] }
  0x23   :  { %455 = vmatpush.bf16.msra.mxu3 %v3405_v19 }
  0x24   :  { %414 = vmatpush.bf16.msra.mxu0 %v3380_v20 }
  0x25   :  { %428 = vmatpush.bf16.msra.mxu1 %v3388_v21  ;;  %v3551_v15 = vpop.eup %3550 }
  0x26   :  { %442 = vmatpush.bf16.msra.mxu2 %v3396_v22  ;;  %v495_v16 = vmul.f32 64.0, %v3551_v15  ;;  %vm499_vm3 = vweird.f32 %v3551_v15 }
  0x27   :  { %456 = vmatpush.bf16.msra.mxu3 %v3404_v23 }
  0x28   :  { %415 = vmatpush.bf16.msra.mxu0 %v3379_v24  ;;  %v496_v17 = vsub.f32 1.0, %v495_v16  ;;  %v3524_v16 = vld [vmem:[%s4577_s10] ss:$0 sm:$0xff] }
  0x29   :  { %429 = vmatpush.bf16.msra.mxu1 %v3387_v25 }
  0x2a   :  { %443 = vmatpush.bf16.msra.mxu2 %v3395_v28  ;;  %v497_v18 = vmul.f32 %v3551_v15, %v496_v17 }
  0x2b   :  { %457 = vmatpush.bf16.msra.mxu3 %v3403_v29 }
  0x2c   :  { %416 = vmatpush.bf16.msra.mxu0 %v3378_v30  ;;  %v498_v19 = vadd.f32 %v3551_v15, %v497_v18 }
  0x2d   :  { %430 = vmatpush.bf16.msra.mxu1 %v3386_v31  ;;  %v3418_v31 = vld [vmem:[%s4609_s0 + $0x18] sm:$0xff] }
  0x2e   :  { %444 = vmatpush.bf16.msra.mxu2 %v3394_v32  ;;  %v3896_v20 = vsel %vm499_vm3, %v3551_v15, %v498_v19  ;;  %v3422_v32 = vld [vmem:[%s4610_s5 + $0x18] sm:$0xff] }
  0x2f   :  { %458 = vmatpush.bf16.msra.mxu3 %v3402_v33  ;;  %417 = vmatmul.bf16.vlgmr.msra.gmra.mxu0 %v2613_v44  ;;  %v3426_v33 = vld [vmem:[%s4575_s7 + $0x18] sm:$0xff]  ;;  %v3423_v44 = vld [vmem:[%s4575_s7] sm:$0xff] }
  0x30   :  { %468 = vmatpush.bf16.msrb.mxu0 %v407_v43  ;;  %431 = vmatmul.bf16.vlgmr.msra.gmra.mxu1 %v2617_v45  ;;  %v3419_v43 = vld [vmem:[%s4610_s5] sm:$0xff] }
  0x31   :  { %445 = vmatmul.bf16.vlgmr.msra.gmra.mxu2 %v2621_v46  ;;  %594 = vmatpush.bf16.msrb.mxu1 %v3418_v31 }
  0x32   :  { %459 = vmatmul.bf16.vlgmr.msra.gmra.mxu3 %v2625_v47 }
  0x33   :  { %694 = vmatpush.bf16.msrb.mxu3 %v3426_v33  ;;  %v3431_v33 = vld [vmem:[%s4609_s0 + $0x30] sm:$0xff] }
  0x34   :  { %469 = vmatpush.bf16.msrb.mxu0 %v3413_v48 }
  0x35   :  { %595 = vmatpush.bf16.msrb.mxu1 %v3417_v34 }
  0x37   :  { %695 = vmatpush.bf16.msrb.mxu3 %v3425_v36 }
  0x38   :  { %470 = vmatpush.bf16.msrb.mxu0 %v3412_v49 }
  0x39   :  { %596 = vmatpush.bf16.msrb.mxu1 %v3416_v37  ;;  %v3430_v37 = vld [vmem:[%s4609_s0 + $0x28] sm:$0xff] }
  0x3b   :  { %696 = vmatpush.bf16.msrb.mxu3 %v3424_v39  ;;  %v3429_v39 = vld [vmem:[%s4609_s0 + $0x20] sm:$0xff] }
  0x3c   :  { %471 = vmatpush.bf16.msrb.mxu0 %v3411_v50 }
  0x3d   :  { %597 = vmatpush.bf16.msrb.mxu1 %v3415_v42 }
  0x3f   :  { %697 = vmatpush.bf16.msrb.mxu3 %v3423_v44 }
  0x40   :  { %472 = vmatpush.bf16.msrb.mxu0 %v3410_v51 }
  0x43   :  { %2778 = vmatmul.msk.bf16.vlgmr.msrb.gmra.mxu0 %vm401_vm1, %v2629_v54 }
  0x44   :  { %644 = vmatpush.bf16.msra.mxu0 %v3422_v32 }
  0x48   :  { %645 = vmatpush.bf16.msra.mxu0 %v3421_v35 }
  0x4c   :  { %646 = vmatpush.bf16.msra.mxu0 %v3420_v38 }
  0x50   :  { %647 = vmatpush.bf16.msra.mxu0 %v3419_v43 }
  0xac   :  { %v418_v55 = vpop.f32.mrf.mxu0 }
  0xad   :  { %v432_v56 = vpop.f32.mrf.mxu1 }
  0xae   :  { %v433_v59 = vadd.f32 %v432_v56, %v418_v55 }
  0xb4   :  { %v446_v57 = vpop.f32.mrf.mxu2  ;;  %v420_v58 = vpop.f32.mrf.mxu0 }
  0xb5   :  { %v460_v60 = vpop.f32.mrf.mxu3  ;;  %v447_v61 = vadd.f32 %v446_v57, %v433_v59  ;;  %v434_v62 = vpop.f32.mrf.mxu1 }
  0xb6   :  { %v435_v3 = vadd.f32 %v434_v62, %v420_v58 }
  0xb7   :  { %v461_v63 = vadd.f32 %v460_v60, %v447_v61  ;;  %v3520_v61 = vld [vmem:[%s4611_s4] ss:$0 sm:$0xff] }
  0xbc   :  { %v448_v0 = vpop.f32.mrf.mxu2 }
  0xbd   :  { %v449_v5 = vadd.f32 %v448_v0, %v435_v3  ;;  %v462_v7 = vpop.f32.mrf.mxu3 }
  0xbf   :  { %v463_v9 = vadd.f32 %v462_v7, %v449_v5 }
  0xc0   :  { %v474_v1 = vpop.f32.mrf.mxu0 }
  0xc1   :  { %v475_v4 = vadd.f32 %v474_v1, %v461_v63  ;;  %v3521_v1 = vld [vmem:[%s4612_s2] ss:$0 sm:$0xff] }
  0xc3   :  { %v3888_v6 = vadd.f32 %v479_v2, %v475_v4 }
  0xc5   :  { %v488_v8 = vsel %vm487_vm2, %v3888_v6, 0.0 }
  0xc6   :  { %489 = vadd.xlane.f32.xlu0 %v488_v8 }
  0xc8   :  { %v476_v10 = vpop.f32.mrf.mxu0 }
  0xc9   :  { %v477_v11 = vadd.f32 %v476_v10, %v463_v9  ;;  %v3523_v9 = vld [vmem:[%s4576_s9] ss:$0 sm:$0xff] }
  0xcb   :  { %v3892_v12 = vadd.f32 %v479_v2, %v477_v11 }
  0xcd   :  { %v491_v13 = vsel %vm487_vm2, %v3892_v12, 0.0 }
  0xce   :  { %492 = vadd.xlane.f32.xlu0 %v491_v13 }
 0x139   :  { %v490_v21 = vpop.xlane.xlu0 %489 }
 0x13a   :  { %v501_v22 = vmul.f32 %v3896_v20, %v490_v21 }
 0x13c   :  { %v3900_v23 = vsub.f32 %v3888_v6, %v501_v22 }
 0x13e   :  { %v505_v24 = vmul.f32 %v3900_v23, %v3900_v23 }
 0x140   :  { %v507_v25 = vsel %vm487_vm2, %v505_v24, 0.0 }
 0x141   :  { %508 = vadd.xlane.f32.xlu1 %v507_v25  ;;  %v493_v26 = vpop.xlane.xlu0 %492 }
 0x142   :  { %v502_v27 = vmul.f32 %v3896_v20, %v493_v26 }
 0x144   :  { %v3907_v28 = vsub.f32 %v3892_v12, %v502_v27  ;;  %v3432_v27 = vld [vmem:[%s4609_s0 + $0x38] sm:$0xff] }
 0x146   :  { %v506_v29 = vmul.f32 %v3907_v28, %v3907_v28 }
 0x148   :  { %v510_v30 = vsel %vm487_vm2, %v506_v29, 0.0 }
 0x149   :  { %511 = vadd.xlane.f32.xlu1 %v510_v30 }
 0x1b4   :  { %v509_v40 = vpop.xlane.xlu1 %508 }
 0x1b5   :  { %v513_v41 = vmul.f32 %v509_v40, %v3896_v20  ;;  %v482_v40 = vlaneseq }
 0x1b7   :  { %v515_v45 = vadd.f32 1e-06, %v513_v41  ;;  %v3995_v41 = vand.u32 127, %v482_v40 }
 0x1b9   :  { %3552 = vrsqrt.f32 %v515_v45  ;;  %vm523_vm5 = vweird.f32 %v515_v45  ;;  %vm484_vm12 = vcmp.lt.s32.totalorder %v3995_v41, 5 }
 0x1bc   :  { %v512_v46 = vpop.xlane.xlu1 %511 }
 0x1bd   :  { %v514_v47 = vmul.f32 %v512_v46, %v3896_v20 }
 0x1bf   :  { %v3553_v48 = vpop.eup %3552  ;;  %v516_v49 = vadd.f32 1e-06, %v514_v47 }
 0x1c0   :  { %v518_v50 = vmul.f32 %v3553_v48, %v515_v45  ;;  %vm524_vm4 = vweird.f32 %v3553_v48 }
 0x1c1   :  { %3554 = vrsqrt.f32 %v516_v49  ;;  %vm525_vm6 = vmor %vm523_vm5, %vm524_vm4  ;;  %vm533_vm8 = vweird.f32 %v516_v49 }
 0x1c2   :  { %v519_v51 = vmul.f32 %v3553_v48, %v518_v50 }
 0x1c4   :  { %v520_v52 = vmul.f32 0.5, %v519_v51 }
 0x1c6   :  { %v521_v53 = vsub.f32 1.5, %v520_v52 }
 0x1c7   :  { %v3555_v54 = vpop.eup %3554 }
 0x1c8   :  { %v522_v55 = vmul.f32 %v3553_v48, %v521_v53  ;;  %v528_v56 = vmul.f32 %v3555_v54, %v516_v49  ;;  %vm534_vm7 = vweird.f32 %v3555_v54 }
 0x1c9   :  { %vm535_vm9 = vmor %vm533_vm8, %vm534_vm7 }
 0x1ca   :  { %v529_v57 = vmul.f32 %v3555_v54, %v528_v56  ;;  %v526_v58 = vsel %vm525_vm6, %v3553_v48, %v522_v55 }
 0x1cb   :  { %v537_v62 = vmul.f32 %v526_v58, %v3900_v23 }
 0x1cc   :  { %v530_v59 = vmul.f32 0.5, %v529_v57 }
 0x1cd   :  { %v542_v2 = vmul.f32 %v3520_v61, %v537_v62  ;;  %v3434_v62 = vld [vmem:[%s4610_s5 + $0x28] sm:$0xff] }
 0x1ce   :  { %v531_v60 = vsub.f32 1.5, %v530_v59 }
 0x1cf   :  { %v547_v5 = vadd.f32 %v3521_v1, %v542_v2 }
 0x1d0   :  { %v532_v63 = vmul.f32 %v3555_v54, %v531_v60  ;;  %v3436_v60 = vld [vmem:[%s4610_s5 + $0x38] sm:$0xff] }
 0x1d2   :  { %v536_v0 = vsel %vm535_vm9, %v3555_v54, %v532_v63  ;;  %v3433_v63 = vld [vmem:[%s4610_s5 + $0x20] sm:$0xff] }
 0x1d3   :  { %v538_v3 = vmul.f32 %v536_v0, %v3907_v28  ;;  %v3440_v0 = vld [vmem:[%s4575_s7 + $0x38] sm:$0xff] }
 0x1d5   :  { %v543_v4 = vmul.f32 %v3520_v61, %v538_v3  ;;  %v3435_v61 = vld [vmem:[%s4610_s5 + $0x30] sm:$0xff]  ;;  %v3438_v3 = vld [vmem:[%s4575_s7 + $0x28] sm:$0xff] }
 0x1d7   :  { %v548_v7 = vadd.f32 %v3521_v1, %v543_v4  ;;  %v3439_v1 = vld [vmem:[%s4575_s7 + $0x30] sm:$0xff]  ;;  %v3437_v4 = vld [vmem:[%s4575_s7 + $0x20] sm:$0xff] }
 0x1d9   :  { %v3958_v8 = vpack.c.bf16 %v548_v7, %v547_v5 }
 0x1db   :  { %2795 = vmatmul.msk.bf16.vlgmr.msrb.gmra.mxu1 %vm487_vm2, %v3958_v8  ;;  %2812 = vmatmul.msk.bf16.vlgmr.msra.gmra.mxu0 %vm487_vm2, %v3958_v8 }
 0x1dc   :  { %2829 = vmatmul.msk.bf16.vlgmr.msrb.gmra.mxu3 %vm487_vm2, %v3958_v8 }
 0x258   :  { %v649_v10 = vpop.f32.mrf.mxu0  ;;  %v599_v13 = vpop.f32.mrf.mxu1 }
 0x259   :  { %v650_v11 = vadd.f32 %v3523_v9, %v649_v10  ;;  %v600_v18 = vadd.f32 %v3522_v14, %v599_v13 }
 0x25b   :  { %v706_v15 = vpack.c.bf16 %v650_v11, %v650_v11  ;;  %v704_v25 = vpack.c.bf16 %v600_v18, %v600_v18 }
 0x25d   :  { %v713_v17 = vsel %vm708_vm10, %v706_v15, 0  ;;  %v3428_v15 = vld [vmem:[%s4579_s11 + $0x8] sm:$0xff] }
 0x25e   :  { %722 = vmatpush.bf16.xpose.msra.mxu1 %v713_v17 }
 0x25f   :  { %v699_v19 = vpop.f32.mrf.mxu3 }
 0x260   :  { %v700_v21 = vadd.f32 %v3524_v16, %v699_v19  ;;  %v651_v22 = vpop.f32.mrf.mxu0  ;;  %v601_v29 = vpop.f32.mrf.mxu1 }
 0x261   :  { %v652_v23 = vadd.f32 %v3523_v9, %v651_v22  ;;  %v602_v31 = vadd.f32 %v3522_v14, %v601_v29  ;;  %v3527_v29 = vld [vmem:[%s4577_s10 + $0x1] ss:$0 sm:$0xff] }
 0x262   :  { %v776_v24 = vpack.c.bf16 %v700_v21, %v700_v21 }
 0x263   :  { %v707_v26 = vpack.c.bf16 %v652_v23, %v652_v23  ;;  %v705_v36 = vpack.c.bf16 %v602_v31, %v602_v31 }
 0x264   :  { %v783_v28 = vsel %vm781_vm11, %v776_v24, 0 }
 0x265   :  { %792 = vmatpush.bf16.msra.mxu3 %v783_v28  ;;  %2830 = vmatmul.msk.bf16.vlgmr.msra.gmra.mxu1 %vm708_vm10, %v704_v25  ;;  %v732_v30 = vsel %vm708_vm10, %v707_v26, 0  ;;  %v3525_v26 = vld [vmem:[%s4613_s3 + $0x1] ss:$0 sm:$0xff] }
 0x266   :  { %741 = vmatpush.bf16.xpose.msrb.mxu2 %v732_v30  ;;  %843 = vmatpush.bf16.msrb.mxu1 %v3428_v15  ;;  %v3442_v15 = vld [vmem:[%s4579_s11 + $0x18] sm:$0xff] }
 0x267   :  { %v701_v32 = vpop.f32.mrf.mxu3 }
 0x268   :  { %v702_v34 = vadd.f32 %v3524_v16, %v701_v32  ;;  %v3427_v16 = vld [vmem:[%s4579_s11] sm:$0xff] }
 0x269   :  { %950 = vmatpush.bf16.msrb.mxu3 %v3436_v60 }
 0x26a   :  { %v777_v35 = vpack.c.bf16 %v702_v34, %v702_v34  ;;  %844 = vmatpush.bf16.msrb.mxu1 %v3427_v16  ;;  %v3441_v16 = vld [vmem:[%s4579_s11 + $0x10] sm:$0xff] }
 0x26c   :  { %v802_v38 = vsel %vm781_vm11, %v777_v35, 0 }
 0x26d   :  { %811 = vmatpush.bf16.msrb.mxu0 %v802_v38  ;;  %2831 = vmatmul.msk.bf16.vlgmr.msrb.gmra.mxu2 %vm708_vm10, %v705_v36 }
 0x26e   :  { %898 = vmatpush.bf16.msra.mxu2 %v3432_v27  ;;  %951 = vmatpush.bf16.msrb.mxu3 %v3435_v61 }
 0x271   :  { %1002 = vmatpush.bf16.msra.mxu0 %v3440_v0 }
 0x272   :  { %899 = vmatpush.bf16.msra.mxu2 %v3431_v33  ;;  %952 = vmatpush.bf16.msrb.mxu3 %v3434_v62 }
 0x275   :  { %1003 = vmatpush.bf16.msra.mxu0 %v3439_v1 }
 0x276   :  { %900 = vmatpush.bf16.msra.mxu2 %v3430_v37  ;;  %953 = vmatpush.bf16.msrb.mxu3 %v3433_v63 }
 0x279   :  { %1004 = vmatpush.bf16.msra.mxu0 %v3438_v3 }
 0x27a   :  { %901 = vmatpush.bf16.msra.mxu2 %v3429_v39 }
 0x27d   :  { %2868 = vmatmul.msk.bf16.vlgmr.msra.gmra.mxu2 %vm487_vm2, %v3958_v8  ;;  %1005 = vmatpush.bf16.msra.mxu0 %v3437_v4 }
 0x2e2   :  { %v724_v42 = vpop.f32.mrf.mxu1 }
 0x2e3   :  { %v749_v43 = vsel %vm484_vm12, %v724_v42, -1e+30 }
 0x2e4   :  { %v752_v44 = vsel %vm751_vm13, %v749_v43, -inf }
 0x2e5   :  { %753 = vmax.xlane.f32.xlu2 %v752_v44 }
 0x2ea   :  { %v726_v45 = vpop.f32.mrf.mxu1 }
 0x2f0   :  { %v743_v46 = vpop.f32.mrf.mxu2 }
 0x2f1   :  { %v750_v47 = vsel %vm484_vm12, %v743_v46, -1e+30 }
 0x2f2   :  { %v755_v48 = vsel %vm751_vm13, %v750_v47, -inf }
 0x2f3   :  { %756 = vmax.xlane.f32.xlu2 %v755_v48 }
 0x2f8   :  { %v745_v49 = vpop.f32.mrf.mxu2 }
 0x300   :  { %v903_v25 = vpop.f32.mrf.mxu2 }
 0x301   :  { %v904_v30 = vadd.f32 %v3525_v26, %v903_v25 }
 0x303   :  { %v1012_v35 = vpack.c.bf16 %v904_v30, %v904_v30 }
 0x308   :  { %v905_v38 = vpop.f32.mrf.mxu2 }
 0x309   :  { %v906_v42 = vadd.f32 %v3525_v26, %v905_v38 }
 0x30b   :  { %v1013_v45 = vpack.c.bf16 %v906_v42, %v906_v42 }
 0x358   :  { %v754_v50 = vpop.xlane.xlu2 %753 }
 0x359   :  { %v758_v51 = vsub.f32 %v749_v43, %v754_v50 }
 0x35b   :  { %v760_v52 = vmul.f32 1.442695, %v758_v51 }
 0x35d   :  { %3556 = vpow2.f32 %v760_v52 }
 0x363   :  { %v3557_v53 = vpop.eup %3556 }
 0x364   :  { %v764_v54 = vsel %vm751_vm13, %v3557_v53, 0.0 }
 0x365   :  { %765 = vadd.xlane.f32.xlu0 %v764_v54 }
 0x366   :  { %v757_v55 = vpop.xlane.xlu2 %756 }
 0x367   :  { %v759_v56 = vsub.f32 %v750_v47, %v757_v55 }
 0x369   :  { %v762_v57 = vmul.f32 1.442695, %v759_v56 }
 0x36b   :  { %3558 = vpow2.f32 %v762_v57 }
 0x371   :  { %v3559_v58 = vpop.eup %3558 }
 0x372   :  { %v767_v59 = vsel %vm751_vm13, %v3559_v58, 0.0 }
 0x373   :  { %768 = vadd.xlane.f32.xlu1 %v767_v59 }
 0x3d8   :  { %v766_v2 = vpop.xlane.xlu0 %765 }
 0x3d9   :  { %3560 = vrcp.f32 %v766_v2 }
 0x3df   :  { %v3561_v5 = vpop.eup %3560 }
 0x3e0   :  { %v772_v7 = vmul.f32 %v3561_v5, %v3557_v53 }
 0x3e2   :  { %v774_v9 = vpack.c.bf16 %v772_v7, %v772_v7 }
 0x3e4   :  { %2832 = vmatmul.msk.bf16.vlgmr.msra.gmra.mxu3 %vm751_vm13, %v774_v9 }
 0x3e6   :  { %v769_v10 = vpop.xlane.xlu1 %768 }
 0x3e7   :  { %3562 = vrcp.f32 %v769_v10 }
 0x3ed   :  { %v3563_v11 = vpop.eup %3562 }
 0x3ee   :  { %v773_v13 = vmul.f32 %v3563_v11, %v3559_v58 }
 0x3f0   :  { %v775_v14 = vpack.c.bf16 %v773_v13, %v773_v13 }
 0x3f2   :  { %2833 = vmatmul.msk.bf16.vlgmr.msrb.gmra.mxu0 %vm751_vm13, %v775_v14 }
 0x3f4   :  { %2894 = vmatmul.msk.bf16.vlgmr.msrb.gmra.mxu3 %vm487_vm2, %v3958_v8 }
 0x402   :  { %2920 = vmatmul.msk.bf16.vlgmr.msra.gmra.mxu0 %vm487_vm2, %v3958_v8  ;;  %v3526_v8 = vld [vmem:[%s4576_s9 + $0x1] ss:$0 sm:$0xff] }
 0x467   :  { %v794_v17 = vpop.f32.mrf.mxu3 }
 0x46f   :  { %v796_v18 = vpop.f32.mrf.mxu3  ;;  %v813_v19 = vpop.f32.mrf.mxu0 }
 0x470   :  { %v817_v21 = vpack.c.bf16 %v813_v19, %v794_v17 }
 0x472   :  { %2842 = vmatmul.msk.bf16.vlgmr.msrb.gmra.mxu1 %vm708_vm10, %v817_v21 }
 0x477   :  { %v815_v22 = vpop.f32.mrf.mxu0  ;;  %v955_v23 = vpop.f32.mrf.mxu3 }
 0x478   :  { %v956_v24 = vadd.f32 %v3526_v8, %v955_v23  ;;  %v3528_v22 = vld [vmem:[%s4578_s12] ss:$0 sm:$0xff] }
 0x47a   :  { %v1014_v27 = vpack.c.bf16 %v956_v24, %v956_v24  ;;  %v3529_v24 = vld [vmem:[%s4580_s13] ss:$0 sm:$0xff] }
 0x47c   :  { %v1020_v28 = vsel %vm708_vm10, %v1014_v27, 0 }
 0x47d   :  { %1029 = vmatpush.bf16.xpose.msra.mxu1 %v1020_v28 }
 0x47f   :  { %v957_v31 = vpop.f32.mrf.mxu3  ;;  %v1007_v32 = vpop.f32.mrf.mxu0 }
 0x480   :  { %v958_v33 = vadd.f32 %v3526_v8, %v957_v31  ;;  %v1008_v34 = vadd.f32 %v3527_v29, %v1007_v32 }
 0x482   :  { %v1015_v36 = vpack.c.bf16 %v958_v33, %v958_v33  ;;  %v1080_v37 = vpack.c.bf16 %v1008_v34, %v1008_v34 }
 0x484   :  { %v1039_v39 = vsel %vm708_vm10, %v1015_v36, 0  ;;  %v1086_v40 = vsel %vm781_vm11, %v1080_v37, 0  ;;  %2921 = vmatmul.msk.bf16.vlgmr.msra.gmra.mxu1 %vm708_vm10, %v1012_v35 }
 0x485   :  { %1048 = vmatpush.bf16.xpose.msrb.mxu2 %v1039_v39  ;;  %1095 = vmatpush.bf16.msra.mxu3 %v1086_v40 }
 0x486   :  { %1147 = vmatpush.bf16.msrb.mxu1 %v3442_v15 }
 0x487   :  { %v1009_v43 = vpop.f32.mrf.mxu0 }
 0x488   :  { %v1010_v44 = vadd.f32 %v3527_v29, %v1009_v43 }
 0x48a   :  { %v1081_v46 = vpack.c.bf16 %v1010_v44, %v1010_v44  ;;  %1148 = vmatpush.bf16.msrb.mxu1 %v3441_v16 }
 0x48c   :  { %v1105_v47 = vsel %vm781_vm11, %v1081_v46, 0  ;;  %2922 = vmatmul.msk.bf16.vlgmr.msrb.gmra.mxu2 %vm708_vm10, %v1013_v45  ;;  %v2964_v45 = vld [vmem:[%s4583_s16 + $0x30] sm:$0xf]  ;;  %v3450_v46 = vld [vmem:[%s4583_s16 + $0x34] sm:$0xf0] }
 0x48d   :  { %1114 = vmatpush.bf16.msrb.mxu0 %v1105_v47  ;;  %v3449_v47 = vld [vmem:[%s4583_s16 + $0x34] sm:$0xf] }
 0x4ef   :  { %v846_v48 = vpop.f32.mrf.mxu1 }
 0x4f0   :  { %v854_v23 = vadd.f32 %v3528_v22, %v846_v48  ;;  %v2965_v48 = vor.u32 %v3450_v46, %v2964_v45  ;;  %v3463_v45 = vld [vmem:[%s4585_s18 + $0x60] sm:$0xff]  ;;  %v3454_v46 = vld [vmem:[%s4585_s18 + $0x18] sm:$0xff] }
 0x4f2   :  { %1283 = vmatpush.bf16.msra.mxu2 %v2965_v48  ;;  %v3453_v48 = vld [vmem:[%s4585_s18 + $0x10] sm:$0xff] }
 0x4f7   :  { %v848_v49 = vpop.f32.mrf.mxu1 }
 0x4f8   :  { %v855_v29 = vadd.f32 %v3528_v22, %v848_v49  ;;  %v2966_v49 = vld [vmem:[%s4583_s16 + $0x38] sm:$0xf0] }
 0x501   :  { %v1031_v50 = vpop.f32.mrf.mxu1 }
 0x502   :  { %v1054_v51 = vsel %vm484_vm12, %v1031_v50, -1e+30  ;;  %v2969_v50 = vor.u32 %v3449_v47, %v2966_v49  ;;  %v3462_v47 = vld [vmem:[%s4585_s18 + $0x58] sm:$0xff]  ;;  %v3461_v49 = vld [vmem:[%s4585_s18 + $0x50] sm:$0xff] }
 0x503   :  { %v1056_v52 = vsel %vm751_vm13, %v1054_v51, -inf }
 0x504   :  { %1057 = vmax.xlane.f32.xlu2 %v1056_v52  ;;  %1297 = vmatpush.bf16.msrb.mxu3 %v2969_v50  ;;  %v3448_v52 = vld [vmem:[%s4583_s16 + $0x24] sm:$0xf0]  ;;  %v1230_v50 = vld [vmem:[%s4586_s17] sm:$0x3] }
 0x509   :  { %v1033_v53 = vpop.f32.mrf.mxu1 }
 0x50a   :  { %v3447_v53 = vld [vmem:[%s4583_s16 + $0x24] sm:$0xf] }
 0x50f   :  { %v1050_v54 = vpop.f32.mrf.mxu2 }
 0x510   :  { %v1055_v55 = vsel %vm484_vm12, %v1050_v54, -1e+30 }
 0x511   :  { %v1059_v56 = vsel %vm751_vm13, %v1055_v55, -inf }
 0x512   :  { %1060 = vmax.xlane.f32.xlu0 %v1059_v56 }
 0x517   :  { %v1052_v57 = vpop.f32.mrf.mxu2 }
 0x518   :  { %v2948_v57 = vld [vmem:[%s4583_s16 + $0x10] sm:$0xf] }
 0x577   :  { %v1058_v58 = vpop.xlane.xlu2 %1057 }
 0x578   :  { %v1062_v59 = vsub.f32 %v1054_v51, %v1058_v58  ;;  %v2956_v51 = vld [vmem:[%s4583_s16 + $0x20] sm:$0xf]  ;;  %v3446_v58 = vld [vmem:[%s4583_s16 + $0x14] sm:$0xf0] }
 0x579   :  { %v2957_v54 = vor.u32 %v3448_v52, %v2956_v51  ;;  %v3452_v51 = vld [vmem:[%s4585_s18 + $0x8] sm:$0xff] }
 0x57a   :  { %v1064_v60 = vmul.f32 1.442695, %v1062_v59  ;;  %v3445_v59 = vld [vmem:[%s4583_s16 + $0x14] sm:$0xf]  ;;  %v3460_v52 = vld [vmem:[%s4585_s18 + $0x48] sm:$0xff] }
 0x57b   :  { %1284 = vmatpush.bf16.msra.mxu2 %v2957_v54  ;;  %v1233_v54 = vperm.slane %v1230_v50, 1 }
 0x57c   :  { %3564 = vpow2.f32 %v1064_v60  ;;  %v2949_v60 = vor.u32 %v3446_v58, %v2948_v57  ;;  %v3451_v57 = vld [vmem:[%s4585_s18] sm:$0xff] }
 0x57d   :  { %v3459_v58 = vld [vmem:[%s4585_s18 + $0x40] sm:$0xff] }
 0x57f   :  { %1285 = vmatpush.bf16.msra.mxu2 %v2949_v60 }
 0x582   :  { %v3565_v61 = vpop.eup %3564 }
 0x583   :  { %v1068_v62 = vsel %vm751_vm13, %v3565_v61, 0.0 }
 0x584   :  { %1069 = vadd.xlane.f32.xlu1 %v1068_v62 }
 0x585   :  { %v1061_v63 = vpop.xlane.xlu0 %1060 }
 0x586   :  { %v1063_v0 = vsub.f32 %v1055_v55, %v1061_v63  ;;  %v2958_v55 = vld [vmem:[%s4583_s16 + $0x28] sm:$0xf0] }
 0x587   :  { %v2961_v56 = vor.u32 %v3447_v53, %v2958_v55  ;;  %v1232_v53 = vperm.slane %v1230_v50, 0 }
 0x588   :  { %v1066_v1 = vmul.f32 1.442695, %v1063_v0 }
 0x589   :  { %1298 = vmatpush.bf16.msrb.mxu3 %v2961_v56 }
 0x58a   :  { %3566 = vpow2.f32 %v1066_v1  ;;  %v2940_v1 = vld [vmem:[%s4583_s16] sm:$0xf] }
 0x590   :  { %v3567_v2 = vpop.eup %3566 }
 0x591   :  { %v1071_v3 = vsel %vm751_vm13, %v3567_v2, 0.0 }
 0x592   :  { %1072 = vadd.xlane.f32.xlu2 %v1071_v3  ;;  %v3443_v3 = vld [vmem:[%s4583_s16 + $0x4] sm:$0xf] }
 0x5f7   :  { %v1070_v4 = vpop.xlane.xlu1 %1069 }
 0x5f8   :  { %3568 = vrcp.f32 %v1070_v4 }
 0x5fe   :  { %v3569_v5 = vpop.eup %3568 }
 0x5ff   :  { %v1076_v7 = vmul.f32 %v3569_v5, %v3565_v61  ;;  %v2950_v61 = vld [vmem:[%s4583_s16 + $0x18] sm:$0xf0] }
 0x600   :  { %v2953_v63 = vor.u32 %v3445_v59, %v2950_v61 }
 0x601   :  { %v1078_v9 = vpack.c.bf16 %v1076_v7, %v1076_v7  ;;  %v2942_v7 = vld [vmem:[%s4583_s16 + $0x8] sm:$0xf0] }
 0x602   :  { %1299 = vmatpush.bf16.msrb.mxu3 %v2953_v63 }
 0x603   :  { %2923 = vmatmul.msk.bf16.vlgmr.msra.gmra.mxu3 %vm751_vm13, %v1078_v9  ;;  %v2945_v9 = vor.u32 %v3443_v3, %v2942_v7 }
 0x605   :  { %v1073_v10 = vpop.xlane.xlu2 %1072 }
 0x606   :  { %3570 = vrcp.f32 %v1073_v10  ;;  %1300 = vmatpush.bf16.msrb.mxu3 %v2945_v9 }
 0x60c   :  { %v3571_v11 = vpop.eup %3570 }
 0x60d   :  { %v1077_v13 = vmul.f32 %v3571_v11, %v3567_v2  ;;  %v3444_v2 = vld [vmem:[%s4583_s16 + $0x4] sm:$0xf0] }
 0x60e   :  { %v2941_v5 = vor.u32 %v3444_v2, %v2940_v1 }
 0x60f   :  { %v1079_v14 = vpack.c.bf16 %v1077_v13, %v1077_v13 }
 0x610   :  { %1286 = vmatpush.bf16.msra.mxu2 %v2941_v5 }
 0x611   :  { %2924 = vmatmul.msk.bf16.vlgmr.msrb.gmra.mxu0 %vm751_vm13, %v1079_v14 }
 0x686   :  { %v1097_v17 = vpop.f32.mrf.mxu3 }
 0x68e   :  { %v1099_v18 = vpop.f32.mrf.mxu3  ;;  %v1116_v19 = vpop.f32.mrf.mxu0 }
 0x68f   :  { %v1120_v21 = vpack.c.bf16 %v1116_v19, %v1097_v17 }
 0x691   :  { %2937 = vmatmul.msk.bf16.vlgmr.msrb.gmra.mxu1 %vm708_vm10, %v1120_v21 }
 0x696   :  { %v1118_v8 = vpop.f32.mrf.mxu0 }
 0x70e   :  { %v1150_v25 = vpop.f32.mrf.mxu1 }
 0x70f   :  { %v1155_v26 = vadd.f32 %v1150_v25, %v854_v23 }
 0x711   :  { %v1161_v27 = vmul.f32 %v3529_v24, %v1155_v26  ;;  %v3530_v26 = vld [vmem:[%s4581_s14] ss:$0 sm:$0xff] }
 0x713   :  { %v4082_v28 = vadd.f32 %v1161_v27, %v3888_v6 }
 0x715   :  { %v1167_v30 = vsel %vm487_vm2, %v4082_v28, 0.0 }
 0x716   :  { %1168 = vadd.xlane.f32.xlu0 %v1167_v30  ;;  %v1152_v31 = vpop.f32.mrf.mxu1 }
 0x717   :  { %v1156_v32 = vadd.f32 %v1152_v31, %v855_v29  ;;  %v3531_v31 = vld [vmem:[%s4582_s15] ss:$0 sm:$0xff] }
 0x719   :  { %v1162_v33 = vmul.f32 %v3529_v24, %v1156_v32 }
 0x71b   :  { %v4087_v34 = vadd.f32 %v1162_v33, %v3892_v12 }
 0x71d   :  { %v1170_v35 = vsel %vm487_vm2, %v4087_v34, 0.0 }
 0x71e   :  { %1171 = vadd.xlane.f32.xlu1 %v1170_v35 }
 0x789   :  { %v1169_v36 = vpop.xlane.xlu0 %1168 }
 0x78a   :  { %v1173_v37 = vmul.f32 %v1169_v36, %v3896_v20 }
 0x78c   :  { %v4093_v6 = vsub.f32 %v4082_v28, %v1173_v37 }
 0x78e   :  { %v1177_v38 = vmul.f32 %v4093_v6, %v4093_v6 }
 0x790   :  { %v1179_v39 = vsel %vm487_vm2, %v1177_v38, 0.0 }
 0x791   :  { %1180 = vadd.xlane.f32.xlu2 %v1179_v39  ;;  %v1172_v40 = vpop.xlane.xlu1 %1171  ;;  %v3466_v39 = vld [vmem:[%s4585_s18 + $0x78] sm:$0xff] }
 0x792   :  { %v1174_v12 = vmul.f32 %v1172_v40, %v3896_v20  ;;  %1491 = vmatpush.bf16.msra.mxu1 %v3466_v39  ;;  %v3457_v40 = vld [vmem:[%s4585_s18 + $0x30] sm:$0xff] }
 0x794   :  { %v4100_v42 = vsub.f32 %v4087_v34, %v1174_v12  ;;  %v3465_v12 = vld [vmem:[%s4585_s18 + $0x70] sm:$0xff] }
 0x796   :  { %v1178_v43 = vmul.f32 %v4100_v42, %v4100_v42  ;;  %1492 = vmatpush.bf16.msra.mxu1 %v3465_v12 }
 0x798   :  { %v1182_v44 = vsel %vm487_vm2, %v1178_v43, 0.0  ;;  %v3464_v43 = vld [vmem:[%s4585_s18 + $0x68] sm:$0xff] }
 0x799   :  { %1183 = vadd.xlane.f32.xlu0 %v1182_v44  ;;  %v3455_v44 = vld [vmem:[%s4585_s18 + $0x20] sm:$0xff] }
 0x79a   :  { %1493 = vmatpush.bf16.msra.mxu1 %v3464_v43  ;;  %v3532_v43 = vld [vmem:[%s4584_s19] ss:$0 sm:$0xff] }
 0x79e   :  { %1494 = vmatpush.bf16.msra.mxu1 %v3463_v45 }
 0x7a2   :  { %1495 = vmatpush.bf16.msra.mxu1 %v3462_v47  ;;  %v3533_v47 = vld [vmem:[%s4587_s20] ss:$0 sm:$0xff] }
 0x7a6   :  { %1496 = vmatpush.bf16.msra.mxu1 %v3461_v49 }
 0x7aa   :  { %1497 = vmatpush.bf16.msra.mxu1 %v3460_v52 }
 0x7ae   :  { %1498 = vmatpush.bf16.msra.mxu1 %v3459_v58 }
 0x804   :  { %v1181_v62 = vpop.xlane.xlu2 %1180 }
 0x805   :  { %v1185_v0 = vmul.f32 %v1181_v62, %v3896_v20 }
 0x807   :  { %v1187_v4 = vadd.f32 1e-06, %v1185_v0 }
 0x809   :  { %3572 = vrsqrt.f32 %v1187_v4  ;;  %vm1195_vm15 = vweird.f32 %v1187_v4 }
 0x80c   :  { %v1184_v10 = vpop.xlane.xlu0 %1183 }
 0x80d   :  { %v1186_v11 = vmul.f32 %v1184_v10, %v3896_v20 }
 0x80f   :  { %v3573_v13 = vpop.eup %3572  ;;  %v1188_v14 = vadd.f32 1e-06, %v1186_v11 }
 0x810   :  { %v1190_v15 = vmul.f32 %v3573_v13, %v1187_v4  ;;  %vm1196_vm14 = vweird.f32 %v3573_v13 }
 0x811   :  { %3574 = vrsqrt.f32 %v1188_v14  ;;  %vm1197_vm0 = vmor %vm1195_vm15, %vm1196_vm14  ;;  %vm1205_vm3 = vweird.f32 %v1188_v14 }
 0x812   :  { %v1191_v16 = vmul.f32 %v3573_v13, %v1190_v15 }
 0x814   :  { %v1192_v17 = vmul.f32 0.5, %v1191_v16 }
 0x816   :  { %v1193_v18 = vsub.f32 1.5, %v1192_v17 }
 0x817   :  { %v3575_v19 = vpop.eup %3574 }
 0x818   :  { %v1194_v21 = vmul.f32 %v3573_v13, %v1193_v18  ;;  %v1200_v8 = vmul.f32 %v3575_v19, %v1188_v14  ;;  %vm1206_vm1 = vweird.f32 %v3575_v19 }
 0x819   :  { %vm1207_vm4 = vmor %vm1205_vm3, %vm1206_vm1 }
 0x81a   :  { %v1201_v22 = vmul.f32 %v3575_v19, %v1200_v8  ;;  %v1198_v23 = vsel %vm1197_vm0, %v3573_v13, %v1194_v21 }
 0x81b   :  { %v1209_v27 = vmul.f32 %v1198_v23, %v4093_v6  ;;  %v3458_v6 = vld [vmem:[%s4585_s18 + $0x38] sm:$0xff] }
 0x81c   :  { %v1202_v24 = vmul.f32 0.5, %v1201_v22  ;;  %1477 = vmatpush.bf16.msra.mxu0 %v3458_v6 }
 0x81d   :  { %v1214_v32 = vmul.f32 %v3530_v26, %v1209_v27 }
 0x81e   :  { %v1203_v25 = vsub.f32 1.5, %v1202_v24 }
 0x81f   :  { %v1219_v36 = vadd.f32 %v3531_v31, %v1214_v32 }
 0x820   :  { %v1204_v29 = vmul.f32 %v3575_v19, %v1203_v25  ;;  %1478 = vmatpush.bf16.msra.mxu0 %v3457_v40 }
 0x822   :  { %v1208_v30 = vsel %vm1207_vm4, %v3575_v19, %v1204_v29 }
 0x823   :  { %v1210_v33 = vmul.f32 %v1208_v30, %v4100_v42  ;;  %v3456_v42 = vld [vmem:[%s4585_s18 + $0x28] sm:$0xff] }
 0x824   :  { %1479 = vmatpush.bf16.msra.mxu0 %v3456_v42 }
 0x825   :  { %v1215_v35 = vmul.f32 %v3530_v26, %v1210_v33 }
 0x827   :  { %v1220_v37 = vadd.f32 %v3531_v31, %v1215_v35 }
 0x828   :  { %1480 = vmatpush.bf16.msra.mxu0 %v3455_v44 }
 0x829   :  { %v1221_v38 = vpack.c.bf16 %v1220_v37, %v1219_v36 }
 0x82b   :  { %2970 = vmatmul.msk.bf16.vlgmr.msra.gmra.mxu2 %vm487_vm2, %v1221_v38  ;;  %2971 = vmatmul.msk.bf16.vlgmr.msrb.gmra.mxu3 %vm487_vm2, %v1221_v38 }
 0x82c   :  { %1481 = vmatpush.bf16.msra.mxu0 %v3454_v46 }
 0x830   :  { %1482 = vmatpush.bf16.msra.mxu0 %v3453_v48 }
 0x834   :  { %1483 = vmatpush.bf16.msra.mxu0 %v3452_v51 }
 0x838   :  { %1484 = vmatpush.bf16.msra.mxu0 %v3451_v57 }
 0x8ae   :  { %v1288_v55 = vpop.f32.mrf.mxu2  ;;  %v1302_v56 = vpop.f32.mrf.mxu3 }
 0x8af   :  { %v1289_v59 = vadd.f32 %v1288_v55, %v1232_v53  ;;  %v1303_v60 = vadd.f32 %v1302_v56, %v1233_v54 }
 0x8b1   :  { %v1307_v61 = vmul.f32 %v1289_v59, %v1289_v59  ;;  %v1308_v62 = vmul.f32 %v1303_v60, %v1303_v60 }
 0x8b3   :  { %v1311_v63 = vmul.f32 %v1307_v61, %v1289_v59  ;;  %v1312_v0 = vmul.f32 %v1308_v62, %v1303_v60 }
 0x8b5   :  { %v1315_v1 = vmul.f32 0.044715, %v1311_v63  ;;  %v1316_v2 = vmul.f32 0.044715, %v1312_v0 }
 0x8b6   :  { %v1290_v3 = vpop.f32.mrf.mxu2  ;;  %v1304_v4 = vpop.f32.mrf.mxu3 }
 0x8b7   :  { %v1319_v5 = vadd.f32 %v1315_v1, %v1289_v59  ;;  %v1320_v7 = vadd.f32 %v1316_v2, %v1303_v60  ;;  %v1291_v9 = vadd.f32 %v1290_v3, %v1232_v53  ;;  %v1305_v10 = vadd.f32 %v1304_v4, %v1233_v54  ;;  %v3470_v3 = vld [vmem:[%s4609_s0 + $0x58] sm:$0xff] }
 0x8b8   :  { %v3474_v4 = vld [vmem:[%s4610_s5 + $0x58] sm:$0xff]  ;;  %1619 = vmatpush.bf16.msrb.mxu2 %v3470_v3 }
 0x8b9   :  { %v1323_v11 = vmul.f32 0.7978846, %v1319_v5  ;;  %v1309_v13 = vmul.f32 %v1291_v9, %v1291_v9  ;;  %v1310_v14 = vmul.f32 %v1305_v10, %v1305_v10  ;;  %v1324_v15 = vmul.f32 0.7978846, %v1320_v7  ;;  %1671 = vmatpush.bf16.msra.mxu3 %v3474_v4  ;;  %v3469_v5 = vld [vmem:[%s4609_s0 + $0x50] sm:$0xff] }
 0x8ba   :  { %v3473_v7 = vld [vmem:[%s4610_s5 + $0x50] sm:$0xff] }
 0x8bb   :  { %v1313_v16 = vmul.f32 %v1309_v13, %v1291_v9  ;;  %v1314_v17 = vmul.f32 %v1310_v14, %v1305_v10  ;;  %3576 = vtanh.f32 %v1323_v11 }
 0x8bc   :  { %3578 = vtanh.f32 %v1324_v15  ;;  %1620 = vmatpush.bf16.msrb.mxu2 %v3469_v5  ;;  %v3467_v15 = vld [vmem:[%s4609_s0 + $0x40] sm:$0xff] }
 0x8bd   :  { %v1317_v18 = vmul.f32 0.044715, %v1313_v16  ;;  %v1318_v19 = vmul.f32 0.044715, %v1314_v17  ;;  %1672 = vmatpush.bf16.msra.mxu3 %v3473_v7  ;;  %v3471_v16 = vld [vmem:[%s4610_s5 + $0x40] sm:$0xff]  ;;  %v3478_v17 = vld [vmem:[%s4575_s7 + $0x58] sm:$0xff] }
 0x8be   :  { %v3482_v7 = vld [vmem:[%s4609_s0 + $0x68] sm:$0xff] }
 0x8bf   :  { %v1321_v21 = vadd.f32 %v1317_v18, %v1291_v9  ;;  %v1322_v8 = vadd.f32 %v1318_v19, %v1305_v10 }
 0x8c1   :  { %v1325_v22 = vmul.f32 0.7978846, %v1321_v21  ;;  %v1326_v23 = vmul.f32 0.7978846, %v1322_v8  ;;  %v3577_v24 = vpop.eup %3576  ;;  %v3477_v21 = vld [vmem:[%s4575_s7 + $0x50] sm:$0xff] }
 0x8c2   :  { %v3579_v25 = vpop.eup %3578  ;;  %v1331_v26 = vadd.f32 1.0, %v3577_v24  ;;  %v3476_v24 = vld [vmem:[%s4575_s7 + $0x48] sm:$0xff] }
 0x8c3   :  { %3580 = vtanh.f32 %v1325_v22  ;;  %v1332_v27 = vadd.f32 1.0, %v3579_v25 }
 0x8c4   :  { %3582 = vtanh.f32 %v1326_v23  ;;  %v1335_v31 = vmul.f32 0.5, %v1331_v26 }
 0x8c5   :  { %v1336_v33 = vmul.f32 0.5, %v1332_v27  ;;  %v3475_v27 = vld [vmem:[%s4575_s7 + $0x40] sm:$0xff] }
 0x8c6   :  { %v1339_v38 = vmul.f32 %v1335_v31, %v1289_v59 }
 0x8c7   :  { %v1340_v39 = vmul.f32 %v1336_v33, %v1303_v60 }
 0x8c9   :  { %v3581_v29 = vpop.eup %3580 }
 0x8ca   :  { %v3583_v30 = vpop.eup %3582  ;;  %v1333_v32 = vadd.f32 1.0, %v3581_v29 }
 0x8cb   :  { %v1334_v35 = vadd.f32 1.0, %v3583_v30 }
 0x8cc   :  { %v1337_v36 = vmul.f32 0.5, %v1333_v32 }
 0x8cd   :  { %v1338_v37 = vmul.f32 0.5, %v1334_v35 }
 0x8ce   :  { %v1341_v6 = vmul.f32 %v1337_v36, %v1291_v9  ;;  %v3468_v9 = vld [vmem:[%s4609_s0 + $0x48] sm:$0xff] }
 0x8cf   :  { %v1342_v40 = vmul.f32 %v1338_v37, %v1305_v10  ;;  %v3472_v10 = vld [vmem:[%s4610_s5 + $0x48] sm:$0xff]  ;;  %1621 = vmatpush.bf16.msrb.mxu2 %v3468_v9 }
 0x8d0   :  { %v1343_v12 = vpack.c.bf16 %v1341_v6, %v1339_v38  ;;  %1673 = vmatpush.bf16.msra.mxu3 %v3472_v10  ;;  %v3534_v38 = vld [vmem:[%s4611_s4 + $0x1] ss:$0 sm:$0xff] }
 0x8d1   :  { %v1344_v42 = vpack.c.bf16 %v1342_v40, %v1340_v39  ;;  %v3481_v10 = vld [vmem:[%s4609_s0 + $0x60] sm:$0xff] }
 0x8d2   :  { %1485 = vmatmul.bf16.vlgmr.msra.gmra.mxu0 %v1343_v12  ;;  %v3535_v12 = vld [vmem:[%s4612_s2 + $0x1] ss:$0 sm:$0xff] }
 0x8d3   :  { %1499 = vmatmul.bf16.vlgmr.msra.gmra.mxu1 %v1344_v42  ;;  %1622 = vmatpush.bf16.msrb.mxu2 %v3467_v15 }
 0x8d4   :  { %1674 = vmatpush.bf16.msra.mxu3 %v3471_v16 }
 0x8d7   :  { %1723 = vmatpush.bf16.msra.mxu2 %v3478_v17 }
 0x8db   :  { %1724 = vmatpush.bf16.msra.mxu2 %v3477_v21 }
 0x8df   :  { %1725 = vmatpush.bf16.msra.mxu2 %v3476_v24 }
 0x8e3   :  { %1726 = vmatpush.bf16.msra.mxu2 %v3475_v27 }
 0x94f   :  { %v1486_v44 = vpop.f32.mrf.mxu0 }
 0x950   :  { %v1487_v45 = vadd.f32 %v3532_v43, %v1486_v44  ;;  %v1500_v46 = vpop.f32.mrf.mxu1 }
 0x952   :  { %v1501_v48 = vadd.f32 %v1500_v46, %v1487_v45 }
 0x954   :  { %v1509_v49 = vmul.f32 %v3533_v47, %v1501_v48  ;;  %v3537_v48 = vld [vmem:[%s4576_s9 + $0x2] ss:$0 sm:$0xff] }
 0x956   :  { %v4223_v50 = vadd.f32 %v1509_v49, %v4082_v28 }
 0x957   :  { %v1488_v51 = vpop.f32.mrf.mxu0 }
 0x958   :  { %v1489_v52 = vadd.f32 %v3532_v43, %v1488_v51  ;;  %v1517_v53 = vsel %vm487_vm2, %v4223_v50, 0.0  ;;  %v1502_v54 = vpop.f32.mrf.mxu1 }
 0x959   :  { %1518 = vadd.xlane.f32.xlu1 %v1517_v53  ;;  %v3536_v53 = vld [vmem:[%s4613_s3 + $0x2] ss:$0 sm:$0xff] }
 0x95a   :  { %v1503_v55 = vadd.f32 %v1502_v54, %v1489_v52 }
 0x95c   :  { %v1510_v56 = vmul.f32 %v3533_v47, %v1503_v55 }
 0x95e   :  { %v4228_v57 = vadd.f32 %v1510_v56, %v4087_v34 }
 0x960   :  { %v1520_v58 = vsel %vm487_vm2, %v4228_v57, 0.0 }
 0x961   :  { %1521 = vadd.xlane.f32.xlu2 %v1520_v58 }
 0x9cc   :  { %v1519_v59 = vpop.xlane.xlu1 %1518 }
 0x9cd   :  { %v1523_v28 = vmul.f32 %v1519_v59, %v3896_v20 }
 0x9cf   :  { %v1525_v60 = vsub.f32 %v4223_v50, %v1523_v28 }
 0x9d1   :  { %v1527_v61 = vmul.f32 %v1525_v60, %v1525_v60 }
 0x9d3   :  { %v1529_v62 = vsel %vm487_vm2, %v1527_v61, 0.0 }
 0x9d4   :  { %v1522_v63 = vpop.xlane.xlu2 %1521  ;;  %1530 = vadd.xlane.f32.xlu0 %v1529_v62  ;;  %v3484_v62 = vld [vmem:[%s4609_s0 + $0x78] sm:$0xff] }
 0x9d5   :  { %v1524_v0 = vmul.f32 %v1522_v63, %v3896_v20 }
 0x9d7   :  { %v1526_v1 = vsub.f32 %v4228_v57, %v1524_v0  ;;  %v3538_v0 = vld [vmem:[%s4577_s10 + $0x2] ss:$0 sm:$0xff] }
 0x9d9   :  { %v1528_v34 = vmul.f32 %v1526_v1, %v1526_v1 }
 0x9db   :  { %v1532_v2 = vsel %vm487_vm2, %v1528_v34, 0.0  ;;  %v3483_v34 = vld [vmem:[%s4609_s0 + $0x70] sm:$0xff] }
 0x9dc   :  { %1533 = vadd.xlane.f32.xlu1 %v1532_v2 }
 0xa47   :  { %v1531_v11 = vpop.xlane.xlu0 %1530 }
 0xa48   :  { %v1535_v13 = vmul.f32 %v1531_v11, %v3896_v20 }
 0xa4a   :  { %v1537_v14 = vadd.f32 1e-06, %v1535_v13 }
 0xa4c   :  { %3584 = vrsqrt.f32 %v1537_v14  ;;  %vm1545_vm6 = vweird.f32 %v1537_v14 }
 0xa4f   :  { %v1534_v18 = vpop.xlane.xlu1 %1533 }
 0xa50   :  { %v1536_v19 = vmul.f32 %v1534_v18, %v3896_v20 }
 0xa52   :  { %v3585_v8 = vpop.eup %3584  ;;  %v1538_v22 = vadd.f32 1e-06, %v1536_v19 }
 0xa53   :  { %v1540_v23 = vmul.f32 %v3585_v8, %v1537_v14  ;;  %vm1546_vm5 = vweird.f32 %v3585_v8 }
 0xa54   :  { %3586 = vrsqrt.f32 %v1538_v22  ;;  %vm1547_vm7 = vmor %vm1545_vm6, %vm1546_vm5  ;;  %vm1555_vm9 = vweird.f32 %v1538_v22 }
 0xa55   :  { %v1541_v25 = vmul.f32 %v3585_v8, %v1540_v23 }
 0xa57   :  { %v1542_v26 = vmul.f32 0.5, %v1541_v25 }
 0xa59   :  { %v1543_v29 = vsub.f32 1.5, %v1542_v26 }
 0xa5a   :  { %v3587_v30 = vpop.eup %3586 }
 0xa5b   :  { %v1544_v31 = vmul.f32 %v3585_v8, %v1543_v29  ;;  %v1550_v32 = vmul.f32 %v3587_v30, %v1538_v22  ;;  %vm1556_vm8 = vweird.f32 %v3587_v30 }
 0xa5c   :  { %vm1557_vm14 = vmor %vm1555_vm9, %vm1556_vm8 }
 0xa5d   :  { %v1551_v33 = vmul.f32 %v3587_v30, %v1550_v32  ;;  %v1548_v35 = vsel %vm1547_vm7, %v3585_v8, %v1544_v31 }
 0xa5e   :  { %v1559_v6 = vmul.f32 %v1548_v35, %v1525_v60 }
 0xa5f   :  { %v1552_v36 = vmul.f32 0.5, %v1551_v33 }
 0xa60   :  { %v1564_v42 = vmul.f32 %v3534_v38, %v1559_v6  ;;  %v3491_v6 = vld [vmem:[%s4575_s7 + $0x70] sm:$0xff] }
 0xa61   :  { %v1553_v37 = vsub.f32 1.5, %v1552_v36  ;;  %v3488_v36 = vld [vmem:[%s4610_s5 + $0x78] sm:$0xff] }
 0xa62   :  { %v1569_v45 = vadd.f32 %v3535_v12, %v1564_v42  ;;  %v3489_v42 = vld [vmem:[%s4575_s7 + $0x60] sm:$0xff] }
 0xa63   :  { %v1554_v39 = vmul.f32 %v3587_v30, %v1553_v37  ;;  %v3492_v37 = vld [vmem:[%s4575_s7 + $0x78] sm:$0xff] }
 0xa65   :  { %v1558_v40 = vsel %vm1557_vm14, %v3587_v30, %v1554_v39  ;;  %v3486_v39 = vld [vmem:[%s4610_s5 + $0x68] sm:$0xff] }
 0xa66   :  { %v1560_v43 = vmul.f32 %v1558_v40, %v1526_v1  ;;  %v3490_v40 = vld [vmem:[%s4575_s7 + $0x68] sm:$0xff] }
 0xa68   :  { %v1565_v44 = vmul.f32 %v3534_v38, %v1560_v43  ;;  %v3487_v38 = vld [vmem:[%s4610_s5 + $0x70] sm:$0xff] }
 0xa6a   :  { %v1570_v46 = vadd.f32 %v3535_v12, %v1565_v44  ;;  %v3485_v12 = vld [vmem:[%s4610_s5 + $0x60] sm:$0xff] }
 0xa6c   :  { %v4282_v47 = vpack.c.bf16 %v1570_v46, %v1569_v45 }
 0xa6e   :  { %3064 = vmatmul.msk.bf16.vlgmr.msrb.gmra.mxu2 %vm487_vm2, %v4282_v47  ;;  %3090 = vmatmul.msk.bf16.vlgmr.msra.gmra.mxu3 %vm487_vm2, %v4282_v47 }
 0xa7e   :  { %3116 = vmatmul.msk.bf16.vlgmr.msra.gmra.mxu2 %vm487_vm2, %v4282_v47 }
 0xaf1   :  { %v1624_v49 = vpop.f32.mrf.mxu2  ;;  %v1676_v51 = vpop.f32.mrf.mxu3 }
 0xaf2   :  { %v1677_v52 = vadd.f32 %v3537_v48, %v1676_v51  ;;  %v1625_v56 = vadd.f32 %v3536_v53, %v1624_v49 }
 0xaf4   :  { %v1735_v54 = vpack.c.bf16 %v1677_v52, %v1677_v52  ;;  %v1733_v60 = vpack.c.bf16 %v1625_v56, %v1625_v56 }
 0xaf6   :  { %v1741_v55 = vsel %vm708_vm10, %v1735_v54, 0  ;;  %v3479_v54 = vld [vmem:[%s4579_s11 + $0x20] sm:$0xff] }
 0xaf7   :  { %1750 = vmatpush.bf16.xpose.msrb.mxu3 %v1741_v55 }
 0xaf9   :  { %v1626_v58 = vpop.f32.mrf.mxu2  ;;  %v1678_v59 = vpop.f32.mrf.mxu3 }
 0xafa   :  { %v1679_v28 = vadd.f32 %v3537_v48, %v1678_v59  ;;  %v1627_v1 = vadd.f32 %v3536_v53, %v1626_v58  ;;  %v3480_v53 = vld [vmem:[%s4579_s11 + $0x28] sm:$0xff] }
 0xafc   :  { %v1736_v61 = vpack.c.bf16 %v1679_v28, %v1679_v28  ;;  %v1734_v4 = vpack.c.bf16 %v1627_v1, %v1627_v1 }
 0xafe   :  { %v1760_v63 = vsel %vm708_vm10, %v1736_v61, 0  ;;  %3117 = vmatmul.msk.bf16.vlgmr.msrb.gmra.mxu3 %vm708_vm10, %v1733_v60 }
 0xaff   :  { %1769 = vmatpush.bf16.xpose.msrb.mxu0 %v1760_v63  ;;  %1868 = vmatpush.bf16.msra.mxu3 %v3480_v53  ;;  %v3539_v63 = vld [vmem:[%s4613_s3 + $0x3] ss:$0 sm:$0xff]  ;;  %v3493_v53 = vld [vmem:[%s4579_s11 + $0x30] sm:$0xff] }
 0xb01   :  { %v1728_v2 = vpop.f32.mrf.mxu2 }
 0xb02   :  { %v1729_v3 = vadd.f32 %v3538_v0, %v1728_v2 }
 0xb03   :  { %1869 = vmatpush.bf16.msra.mxu3 %v3479_v54 }
 0xb04   :  { %v1801_v5 = vpack.c.bf16 %v1729_v3, %v1729_v3 }
 0xb06   :  { %v1807_v9 = vsel %vm781_vm11, %v1801_v5, 0  ;;  %3118 = vmatmul.msk.bf16.vlgmr.msrb.gmra.mxu0 %vm708_vm10, %v1734_v4 }
 0xb07   :  { %1923 = vmatpush.bf16.msra.mxu0 %v3484_v62  ;;  %1816 = vmatpush.bf16.msrb.mxu1 %v1807_v9 }
 0xb09   :  { %v1730_v11 = vpop.f32.mrf.mxu2 }
 0xb0a   :  { %v1731_v13 = vadd.f32 %v3538_v0, %v1730_v11 }
 0xb0b   :  { %1924 = vmatpush.bf16.msra.mxu0 %v3483_v34  ;;  %1975 = vmatpush.bf16.msra.mxu1 %v3488_v36  ;;  %v3541_v34 = vld [vmem:[%s4577_s10 + $0x3] ss:$0 sm:$0xff] }
 0xb0c   :  { %v1802_v14 = vpack.c.bf16 %v1731_v13, %v1731_v13 }
 0xb0e   :  { %v1826_v15 = vsel %vm781_vm11, %v1802_v14, 0 }
 0xb0f   :  { %1925 = vmatpush.bf16.msra.mxu0 %v3482_v7  ;;  %1835 = vmatpush.bf16.msrb.mxu2 %v1826_v15 }
 0xb10   :  { %1976 = vmatpush.bf16.msra.mxu1 %v3487_v38 }
 0xb13   :  { %1926 = vmatpush.bf16.msra.mxu0 %v3481_v10  ;;  %2027 = vmatpush.bf16.msra.mxu2 %v3492_v37 }
 0xb14   :  { %1977 = vmatpush.bf16.msra.mxu1 %v3486_v39 }
 0xb16   :  { %3159 = vmatmul.msk.bf16.vlgmr.msra.gmra.mxu0 %vm487_vm2, %v4282_v47 }
 0xb17   :  { %2028 = vmatpush.bf16.msra.mxu2 %v3491_v6 }
 0xb18   :  { %1978 = vmatpush.bf16.msra.mxu1 %v3485_v12 }
 0xb1b   :  { %2029 = vmatpush.bf16.msra.mxu2 %v3490_v40 }
 0xb1f   :  { %2030 = vmatpush.bf16.msra.mxu2 %v3489_v42 }
 0xb81   :  { %v1752_v16 = vpop.f32.mrf.mxu3 }
 0xb82   :  { %v1775_v17 = vsel %vm484_vm12, %v1752_v16, -1e+30 }
 0xb83   :  { %v1771_v18 = vpop.f32.mrf.mxu0  ;;  %v1777_v19 = vsel %vm751_vm13, %v1775_v17, -inf }
 0xb84   :  { %v1776_v21 = vsel %vm484_vm12, %v1771_v18, -1e+30  ;;  %1778 = vmax.xlane.f32.xlu2 %v1777_v19 }
 0xb85   :  { %v1780_v8 = vsel %vm751_vm13, %v1776_v21, -inf }
 0xb86   :  { %1781 = vmax.xlane.f32.xlu0 %v1780_v8 }
 0xb89   :  { %v1754_v22 = vpop.f32.mrf.mxu3 }
 0xb8b   :  { %v1773_v23 = vpop.f32.mrf.mxu0 }
 0xb93   :  { %v1928_v62 = vpop.f32.mrf.mxu0 }
 0xb94   :  { %v1929_v2 = vadd.f32 %v3539_v63, %v1928_v62 }
 0xb96   :  { %v2037_v9 = vpack.c.bf16 %v1929_v2, %v1929_v2 }
 0xb9b   :  { %v1930_v13 = vpop.f32.mrf.mxu0 }
 0xb9c   :  { %v1931_v16 = vadd.f32 %v3539_v63, %v1930_v13 }
 0xb9e   :  { %v2038_v19 = vpack.c.bf16 %v1931_v16, %v1931_v16 }
 0xbf7   :  { %v1779_v24 = vpop.xlane.xlu2 %1778 }
 0xbf8   :  { %v1783_v25 = vsub.f32 %v1775_v17, %v1779_v24 }
 0xbf9   :  { %v1782_v26 = vpop.xlane.xlu0 %1781 }
 0xbfa   :  { %v1785_v27 = vmul.f32 1.442695, %v1783_v25  ;;  %v1784_v29 = vsub.f32 %v1776_v21, %v1782_v26 }
 0xbfc   :  { %3588 = vpow2.f32 %v1785_v27  ;;  %v1787_v30 = vmul.f32 1.442695, %v1784_v29 }
 0xbfe   :  { %3590 = vpow2.f32 %v1787_v30 }
 0xc02   :  { %v3589_v31 = vpop.eup %3588 }
 0xc03   :  { %v1789_v32 = vsel %vm751_vm13, %v3589_v31, 0.0 }
 0xc04   :  { %v3591_v33 = vpop.eup %3590  ;;  %1790 = vadd.xlane.f32.xlu1 %v1789_v32 }
 0xc05   :  { %v1792_v35 = vsel %vm751_vm13, %v3591_v33, 0.0 }
 0xc06   :  { %1793 = vadd.xlane.f32.xlu2 %v1792_v35 }
 0xc77   :  { %v1791_v43 = vpop.xlane.xlu1 %1790 }
 0xc78   :  { %3592 = vrcp.f32 %v1791_v43 }
 0xc79   :  { %v1794_v44 = vpop.xlane.xlu2 %1793 }
 0xc7a   :  { %3594 = vrcp.f32 %v1794_v44 }
 0xc7e   :  { %v3593_v45 = vpop.eup %3592 }
 0xc7f   :  { %v1797_v46 = vmul.f32 %v3593_v45, %v3589_v31 }
 0xc80   :  { %v3595_v48 = vpop.eup %3594 }
 0xc81   :  { %v1799_v49 = vpack.c.bf16 %v1797_v46, %v1797_v46  ;;  %v1798_v51 = vmul.f32 %v3595_v48, %v3591_v33 }
 0xc83   :  { %v1800_v52 = vpack.c.bf16 %v1798_v51, %v1798_v51  ;;  %3119 = vmatmul.msk.bf16.vlgmr.msrb.gmra.mxu1 %vm751_vm13, %v1799_v49 }
 0xc85   :  { %3120 = vmatmul.msk.bf16.vlgmr.msrb.gmra.mxu2 %vm751_vm13, %v1800_v52  ;;  %v3494_v52 = vld [vmem:[%s4579_s11 + $0x38] sm:$0xff] }
 0xc93   :  { %3185 = vmatmul.msk.bf16.vlgmr.msra.gmra.mxu1 %vm487_vm2, %v4282_v47 }
 0xc95   :  { %3211 = vmatmul.msk.bf16.vlgmr.msra.gmra.mxu2 %vm487_vm2, %v4282_v47  ;;  %v3540_v47 = vld [vmem:[%s4576_s9 + $0x3] ss:$0 sm:$0xff] }
 0xd00   :  { %v1818_v55 = vpop.f32.mrf.mxu1 }
 0xd08   :  { %v1820_v56 = vpop.f32.mrf.mxu1  ;;  %v1837_v58 = vpop.f32.mrf.mxu2 }
 0xd09   :  { %v1841_v59 = vpack.c.bf16 %v1837_v58, %v1818_v55 }
 0xd0b   :  { %3133 = vmatmul.msk.bf16.vlgmr.msra.gmra.mxu3 %vm708_vm10, %v1841_v59 }
 0xd10   :  { %v1839_v28 = vpop.f32.mrf.mxu2  ;;  %v1980_v60 = vpop.f32.mrf.mxu1 }
 0xd11   :  { %v1981_v61 = vadd.f32 %v3540_v47, %v1980_v60  ;;  %v3543_v60 = vld [vmem:[%s4580_s13 + $0x1] ss:$0 sm:$0xff] }
 0xd13   :  { %v2039_v0 = vpack.c.bf16 %v1981_v61, %v1981_v61 }
 0xd15   :  { %v2045_v1 = vsel %vm708_vm10, %v2039_v0, 0 }
 0xd16   :  { %2054 = vmatpush.bf16.xpose.msrb.mxu3 %v2045_v1 }
 0xd18   :  { %v1982_v3 = vpop.f32.mrf.mxu1  ;;  %v2032_v4 = vpop.f32.mrf.mxu2 }
 0xd19   :  { %v1983_v5 = vadd.f32 %v3540_v47, %v1982_v3  ;;  %v2033_v7 = vadd.f32 %v3541_v34, %v2032_v4  ;;  %v3542_v47 = vld [vmem:[%s4578_s12 + $0x1] ss:$0 sm:$0xff] }
 0xd1b   :  { %v2040_v10 = vpack.c.bf16 %v1983_v5, %v1983_v5  ;;  %v2105_v11 = vpack.c.bf16 %v2033_v7, %v2033_v7 }
 0xd1d   :  { %v2064_v14 = vsel %vm708_vm10, %v2040_v10, 0  ;;  %v2111_v15 = vsel %vm781_vm11, %v2105_v11, 0  ;;  %3212 = vmatmul.msk.bf16.vlgmr.msrb.gmra.mxu3 %vm708_vm10, %v2037_v9 }
 0xd1e   :  { %2073 = vmatpush.bf16.xpose.msrb.mxu0 %v2064_v14  ;;  %2120 = vmatpush.bf16.msrb.mxu1 %v2111_v15 }
 0xd1f   :  { %2172 = vmatpush.bf16.msra.mxu3 %v3494_v52 }
 0xd20   :  { %v2034_v17 = vpop.f32.mrf.mxu2 }
 0xd21   :  { %v2035_v18 = vadd.f32 %v3541_v34, %v2034_v17 }
 0xd23   :  { %v2106_v21 = vpack.c.bf16 %v2035_v18, %v2035_v18  ;;  %2173 = vmatpush.bf16.msra.mxu3 %v3493_v53  ;;  %v3267_v18 = vld [vmem:[%s4583_s16 + $0x70] sm:$0xf] }
 0xd25   :  { %v2130_v8 = vsel %vm781_vm11, %v2106_v21, 0  ;;  %3213 = vmatmul.msk.bf16.vlgmr.msrb.gmra.mxu0 %vm708_vm10, %v2038_v19  ;;  %v3502_v19 = vld [vmem:[%s4583_s16 + $0x74] sm:$0xf0]  ;;  %v3501_v21 = vld [vmem:[%s4583_s16 + $0x74] sm:$0xf] }
 0xd26   :  { %2139 = vmatpush.bf16.msrb.mxu2 %v2130_v8  ;;  %v3268_v8 = vor.u32 %v3502_v19, %v3267_v18  ;;  %v3506_v18 = vld [vmem:[%s4585_s18 + $0x98] sm:$0xff] }
 0xd27   :  { %v3514_v19 = vld [vmem:[%s4585_s18 + $0xd8] sm:$0xff] }
 0xd28   :  { %2313 = vmatpush.bf16.msra.mxu0 %v3268_v8  ;;  %v3513_v8 = vld [vmem:[%s4585_s18 + $0xd0] sm:$0xff] }
 0xd8e   :  { %v1871_v22 = vpop.f32.mrf.mxu3 }
 0xd8f   :  { %v1879_v28 = vadd.f32 %v3542_v47, %v1871_v22  ;;  %v3269_v22 = vld [vmem:[%s4583_s16 + $0x78] sm:$0xf0] }
 0xd96   :  { %v1873_v23 = vpop.f32.mrf.mxu3 }
 0xd97   :  { %v1880_v1 = vadd.f32 %v3542_v47, %v1873_v23  ;;  %v3272_v23 = vor.u32 %v3501_v21, %v3269_v22  ;;  %v3505_v21 = vld [vmem:[%s4585_s18 + $0x90] sm:$0xff]  ;;  %v3240_v22 = vld [vmem:[%s4586_s17 + $0x2] sm:$0x3] }
 0xd99   :  { %2327 = vmatpush.bf16.msra.mxu1 %v3272_v23  ;;  %v3504_v23 = vld [vmem:[%s4585_s18 + $0x88] sm:$0xff] }
 0xda0   :  { %v2056_v24 = vpop.f32.mrf.mxu3 }
 0xda1   :  { %v2079_v25 = vsel %vm484_vm12, %v2056_v24, -1e+30  ;;  %v3259_v24 = vld [vmem:[%s4583_s16 + $0x60] sm:$0xf] }
 0xda2   :  { %v2075_v26 = vpop.f32.mrf.mxu0  ;;  %v2081_v27 = vsel %vm751_vm13, %v2079_v25, -inf }
 0xda3   :  { %v2080_v29 = vsel %vm484_vm12, %v2075_v26, -1e+30  ;;  %2082 = vmax.xlane.f32.xlu1 %v2081_v27  ;;  %v3499_v26 = vld [vmem:[%s4583_s16 + $0x64] sm:$0xf] }
 0xda4   :  { %v2084_v30 = vsel %vm751_vm13, %v2080_v29, -inf }
 0xda5   :  { %2085 = vmax.xlane.f32.xlu0 %v2084_v30 }
 0xda8   :  { %v2058_v31 = vpop.f32.mrf.mxu3 }
 0xda9   :  { %v3251_v31 = vld [vmem:[%s4583_s16 + $0x50] sm:$0xf] }
 0xdaa   :  { %v2077_v32 = vpop.f32.mrf.mxu0 }
 0xdab   :  { %v3498_v32 = vld [vmem:[%s4583_s16 + $0x54] sm:$0xf0] }
 0xe16   :  { %v2083_v33 = vpop.xlane.xlu1 %2082 }
 0xe17   :  { %v2087_v35 = vsub.f32 %v2079_v25, %v2083_v33  ;;  %v3500_v25 = vld [vmem:[%s4583_s16 + $0x64] sm:$0xf0]  ;;  %v3497_v33 = vld [vmem:[%s4583_s16 + $0x54] sm:$0xf] }
 0xe18   :  { %v2086_v36 = vpop.xlane.xlu0 %2085  ;;  %v3260_v27 = vor.u32 %v3500_v25, %v3259_v24  ;;  %v3512_v24 = vld [vmem:[%s4585_s18 + $0xc8] sm:$0xff]  ;;  %v2262_v25 = vperm.slane %v3240_v22, 0 }
 0xe19   :  { %v2089_v37 = vmul.f32 1.442695, %v2087_v35  ;;  %v2088_v38 = vsub.f32 %v2080_v29, %v2086_v36  ;;  %v3261_v29 = vld [vmem:[%s4583_s16 + $0x68] sm:$0xf0]  ;;  %v3252_v35 = vor.u32 %v3498_v32, %v3251_v31  ;;  %v3253_v36 = vld [vmem:[%s4583_s16 + $0x58] sm:$0xf0] }
 0xe1a   :  { %v3264_v30 = vor.u32 %v3499_v26, %v3261_v29  ;;  %2314 = vmatpush.bf16.msra.mxu0 %v3260_v27  ;;  %v2263_v26 = vperm.slane %v3240_v22, 1  ;;  %v3511_v31 = vld [vmem:[%s4585_s18 + $0xc0] sm:$0xff] }
 0xe1b   :  { %3596 = vpow2.f32 %v2089_v37  ;;  %v2091_v6 = vmul.f32 1.442695, %v2088_v38  ;;  %v3256_v38 = vor.u32 %v3497_v33, %v3253_v36 }
 0xe1c   :  { %2328 = vmatpush.bf16.msra.mxu1 %v3264_v30  ;;  %v3503_v30 = vld [vmem:[%s4585_s18 + $0x80] sm:$0xff] }
 0xe1d   :  { %3598 = vpow2.f32 %v2091_v6 }
 0xe1e   :  { %2315 = vmatpush.bf16.msra.mxu0 %v3252_v35 }
 0xe20   :  { %2329 = vmatpush.bf16.msra.mxu1 %v3256_v38 }
 0xe21   :  { %v3597_v39 = vpop.eup %3596 }
 0xe22   :  { %v2093_v40 = vsel %vm751_vm13, %v3597_v39, 0.0 }
 0xe23   :  { %v3599_v12 = vpop.eup %3598  ;;  %2094 = vadd.xlane.f32.xlu0 %v2093_v40  ;;  %v3496_v40 = vld [vmem:[%s4583_s16 + $0x44] sm:$0xf0] }
 0xe24   :  { %v2096_v41 = vsel %vm751_vm13, %v3599_v12, 0.0 }
 0xe25   :  { %2097 = vadd.xlane.f32.xlu2 %v2096_v41 }
 0xe96   :  { %v2095_v42 = vpop.xlane.xlu0 %2094 }
 0xe97   :  { %3600 = vrcp.f32 %v2095_v42 }
 0xe98   :  { %v2098_v43 = vpop.xlane.xlu2 %2097 }
 0xe99   :  { %3602 = vrcp.f32 %v2098_v43  ;;  %v3245_v43 = vld [vmem:[%s4583_s16 + $0x48] sm:$0xf0] }
 0xe9d   :  { %v3601_v44 = vpop.eup %3600 }
 0xe9e   :  { %v2101_v45 = vmul.f32 %v3601_v44, %v3597_v39  ;;  %v3243_v39 = vld [vmem:[%s4583_s16 + $0x40] sm:$0xf] }
 0xe9f   :  { %v3603_v46 = vpop.eup %3602  ;;  %v3244_v42 = vor.u32 %v3496_v40, %v3243_v39 }
 0xea0   :  { %v2103_v48 = vpack.c.bf16 %v2101_v45, %v2101_v45  ;;  %v2102_v49 = vmul.f32 %v3603_v46, %v3599_v12  ;;  %v3495_v12 = vld [vmem:[%s4583_s16 + $0x44] sm:$0xf] }
 0xea1   :  { %v3248_v44 = vor.u32 %v3495_v12, %v3245_v43  ;;  %2316 = vmatpush.bf16.msra.mxu0 %v3244_v42 }
 0xea2   :  { %v2104_v51 = vpack.c.bf16 %v2102_v49, %v2102_v49  ;;  %3214 = vmatmul.msk.bf16.vlgmr.msrb.gmra.mxu1 %vm751_vm13, %v2103_v48 }
 0xea3   :  { %2330 = vmatpush.bf16.msra.mxu1 %v3248_v44 }
 0xea4   :  { %3215 = vmatmul.msk.bf16.vlgmr.msrb.gmra.mxu2 %vm751_vm13, %v2104_v51 }
 0xf1f   :  { %v2122_v54 = vpop.f32.mrf.mxu1 }
 0xf27   :  { %v2124_v55 = vpop.f32.mrf.mxu1  ;;  %v2141_v56 = vpop.f32.mrf.mxu2 }
 0xf28   :  { %v2145_v58 = vpack.c.bf16 %v2141_v56, %v2122_v54 }
 0xf2a   :  { %3228 = vmatmul.msk.bf16.vlgmr.msra.gmra.mxu3 %vm708_vm10, %v2145_v58 }
 0xf2f   :  { %v2143_v59 = vpop.f32.mrf.mxu2 }
 0xfad   :  { %v2175_v61 = vpop.f32.mrf.mxu3 }
 0xfae   :  { %v2180_v62 = vadd.f32 %v2175_v61, %v1879_v28  ;;  %v3544_v61 = vld [vmem:[%s4581_s14 + $0x1] ss:$0 sm:$0xff] }
 0xfb0   :  { %v2187_v63 = vmul.f32 %v3543_v60, %v2180_v62 }
 0xfb2   :  { %v4403_v0 = vadd.f32 %v2187_v63, %v4223_v50 }
 0xfb4   :  { %v2195_v34 = vsel %vm487_vm2, %v4403_v0, 0.0 }
 0xfb5   :  { %2196 = vadd.xlane.f32.xlu1 %v2195_v34  ;;  %v2177_v2 = vpop.f32.mrf.mxu3  ;;  %v3545_v34 = vld [vmem:[%s4582_s15 + $0x1] ss:$0 sm:$0xff] }
 0xfb6   :  { %v2181_v3 = vadd.f32 %v2177_v2, %v1880_v1 }
 0xfb8   :  { %v2188_v4 = vmul.f32 %v3543_v60, %v2181_v3 }
 0xfba   :  { %v4408_v5 = vadd.f32 %v2188_v4, %v4228_v57 }
 0xfbc   :  { %v2198_v7 = vsel %vm487_vm2, %v4408_v5, 0.0 }
 0xfbd   :  { %2199 = vadd.xlane.f32.xlu2 %v2198_v7 }
0x1028   :  { %v2197_v9 = vpop.xlane.xlu1 %2196 }
0x1029   :  { %v2201_v10 = vmul.f32 %v2197_v9, %v3896_v20 }
0x102b   :  { %v4414_v50 = vsub.f32 %v4403_v0, %v2201_v10 }
0x102d   :  { %v2205_v11 = vmul.f32 %v4414_v50, %v4414_v50 }
0x102f   :  { %v2207_v13 = vsel %vm487_vm2, %v2205_v11, 0.0  ;;  %v3518_v11 = vld [vmem:[%s4585_s18 + $0xf8] sm:$0xff] }
0x1030   :  { %2208 = vadd.xlane.f32.xlu0 %v2207_v13  ;;  %v2200_v14 = vpop.xlane.xlu2 %2199  ;;  %2523 = vmatpush.bf16.msrb.mxu3 %v3518_v11  ;;  %v3509_v13 = vld [vmem:[%s4585_s18 + $0xb0] sm:$0xff] }
0x1031   :  { %v2202_v57 = vmul.f32 %v2200_v14, %v3896_v20  ;;  %v3517_v14 = vld [vmem:[%s4585_s18 + $0xf0] sm:$0xff] }
0x1033   :  { %v4421_v15 = vsub.f32 %v4408_v5, %v2202_v57  ;;  %v3508_v57 = vld [vmem:[%s4585_s18 + $0xa8] sm:$0xff] }
0x1034   :  { %2524 = vmatpush.bf16.msrb.mxu3 %v3517_v14 }
0x1035   :  { %v2206_v16 = vmul.f32 %v4421_v15, %v4421_v15 }
0x1037   :  { %v2210_v17 = vsel %vm487_vm2, %v2206_v16, 0.0  ;;  %v3507_v16 = vld [vmem:[%s4585_s18 + $0xa0] sm:$0xff] }
0x1038   :  { %2211 = vadd.xlane.f32.xlu1 %v2210_v17  ;;  %v3515_v17 = vld [vmem:[%s4585_s18 + $0xe0] sm:$0xff] }
0x10a3   :  { %v2209_v37 = vpop.xlane.xlu0 %2208 }
0x10a4   :  { %v2213_v6 = vmul.f32 %v2209_v37, %v3896_v20 }
0x10a6   :  { %v2215_v41 = vadd.f32 1e-06, %v2213_v6 }
0x10a8   :  { %3604 = vrsqrt.f32 %v2215_v41  ;;  %vm2223_vm11 = vweird.f32 %v2215_v41 }
0x10ab   :  { %v2212_v45 = vpop.xlane.xlu1 %2211 }
0x10ac   :  { %v2214_v46 = vmul.f32 %v2212_v45, %v3896_v20 }
0x10ae   :  { %v3605_v48 = vpop.eup %3604  ;;  %v2216_v49 = vadd.f32 1e-06, %v2214_v46 }
0x10af   :  { %v2218_v51 = vmul.f32 %v3605_v48, %v2215_v41  ;;  %vm2224_vm10 = vweird.f32 %v3605_v48 }
0x10b0   :  { %3606 = vrsqrt.f32 %v2216_v49  ;;  %vm2225_vm12 = vmor %vm2223_vm11, %vm2224_vm10  ;;  %vm2233_vm15 = vweird.f32 %v2216_v49 }
0x10b1   :  { %v2219_v52 = vmul.f32 %v3605_v48, %v2218_v51 }
0x10b3   :  { %v2220_v53 = vmul.f32 0.5, %v2219_v52 }
0x10b5   :  { %v2221_v54 = vsub.f32 1.5, %v2220_v53 }
0x10b6   :  { %v3607_v55 = vpop.eup %3606 }
0x10b7   :  { %v2222_v56 = vmul.f32 %v3605_v48, %v2221_v54  ;;  %v2228_v58 = vmul.f32 %v3607_v55, %v2216_v49  ;;  %vm2234_vm13 = vweird.f32 %v3607_v55 }
0x10b8   :  { %vm2235_vm0 = vmor %vm2233_vm15, %vm2234_vm13 }
0x10b9   :  { %v2229_v59 = vmul.f32 %v3607_v55, %v2228_v58  ;;  %v2226_v47 = vsel %vm2225_vm12, %v3605_v48, %v2222_v56 }
0x10ba   :  { %v2237_v62 = vmul.f32 %v2226_v47, %v4414_v50  ;;  %v3510_v50 = vld [vmem:[%s4585_s18 + $0xb8] sm:$0xff] }
0x10bb   :  { %v2230_v28 = vmul.f32 0.5, %v2229_v59  ;;  %2509 = vmatpush.bf16.msra.mxu2 %v3510_v50 }
0x10bc   :  { %v2242_v2 = vmul.f32 %v3544_v61, %v2237_v62 }
0x10bd   :  { %v2231_v60 = vsub.f32 1.5, %v2230_v28 }
0x10be   :  { %v2247_v7 = vadd.f32 %v3545_v34, %v2242_v2 }
0x10bf   :  { %v2232_v63 = vmul.f32 %v3607_v55, %v2231_v60  ;;  %2510 = vmatpush.bf16.msra.mxu2 %v3509_v13 }
0x10c1   :  { %v2236_v1 = vsel %vm2235_vm0, %v3607_v55, %v2232_v63 }
0x10c2   :  { %v2238_v3 = vmul.f32 %v2236_v1, %v4421_v15  ;;  %v3516_v15 = vld [vmem:[%s4585_s18 + $0xe8] sm:$0xff] }
0x10c3   :  { %2511 = vmatpush.bf16.msra.mxu2 %v3508_v57  ;;  %2525 = vmatpush.bf16.msrb.mxu3 %v3516_v15  ;;  %v3546_v57 = vld [vmem:[%s4584_s19 + $0x1] ss:$0 sm:$0xff] }
0x10c4   :  { %v2243_v4 = vmul.f32 %v3544_v61, %v2238_v3 }
0x10c6   :  { %v2248_v9 = vadd.f32 %v3545_v34, %v2243_v4 }
0x10c7   :  { %2512 = vmatpush.bf16.msra.mxu2 %v3507_v16  ;;  %2526 = vmatpush.bf16.msrb.mxu3 %v3515_v17 }
0x10c8   :  { %v2249_v10 = vpack.c.bf16 %v2248_v9, %v2247_v7 }
0x10ca   :  { %3273 = vmatmul.msk.bf16.vlgmr.msra.gmra.mxu0 %vm487_vm2, %v2249_v10  ;;  %3274 = vmatmul.msk.bf16.vlgmr.msra.gmra.mxu1 %vm487_vm2, %v2249_v10 }
0x10cb   :  { %2513 = vmatpush.bf16.msra.mxu2 %v3506_v18  ;;  %2527 = vmatpush.bf16.msrb.mxu3 %v3514_v19  ;;  %v3547_v18 = vld [vmem:[%s4587_s20 + $0x1] ss:$0 sm:$0xff] }
0x10cf   :  { %2514 = vmatpush.bf16.msra.mxu2 %v3505_v21  ;;  %2528 = vmatpush.bf16.msrb.mxu3 %v3513_v8 }
0x10d3   :  { %2515 = vmatpush.bf16.msra.mxu2 %v3504_v23  ;;  %2529 = vmatpush.bf16.msrb.mxu3 %v3512_v24 }
0x10d7   :  { %2516 = vmatpush.bf16.msra.mxu2 %v3503_v30  ;;  %2530 = vmatpush.bf16.msrb.mxu3 %v3511_v31 }
0x1147   :  { %v2318_v27 = vpop.f32.mrf.mxu0  ;;  %v2332_v29 = vpop.f32.mrf.mxu1 }
0x1148   :  { %v2319_v32 = vadd.f32 %v2318_v27, %v2262_v25  ;;  %v2333_v33 = vadd.f32 %v2332_v29, %v2263_v26 }
0x114a   :  { %v2337_v35 = vmul.f32 %v2319_v32, %v2319_v32  ;;  %v2338_v36 = vmul.f32 %v2333_v33, %v2333_v33 }
0x114c   :  { %v2341_v37 = vmul.f32 %v2337_v35, %v2319_v32  ;;  %v2342_v38 = vmul.f32 %v2338_v36, %v2333_v33 }
0x114e   :  { %v2345_v6 = vmul.f32 0.044715, %v2341_v37  ;;  %v2346_v39 = vmul.f32 0.044715, %v2342_v38 }
0x114f   :  { %v2320_v40 = vpop.f32.mrf.mxu0  ;;  %v2334_v12 = vpop.f32.mrf.mxu1 }
0x1150   :  { %v2349_v41 = vadd.f32 %v2345_v6, %v2319_v32  ;;  %v2350_v42 = vadd.f32 %v2346_v39, %v2333_v33  ;;  %v2321_v43 = vadd.f32 %v2320_v40, %v2262_v25  ;;  %v2335_v44 = vadd.f32 %v2334_v12, %v2263_v26 }
0x1152   :  { %v2353_v45 = vmul.f32 0.7978846, %v2349_v41  ;;  %v2339_v46 = vmul.f32 %v2321_v43, %v2321_v43  ;;  %v2340_v48 = vmul.f32 %v2335_v44, %v2335_v44  ;;  %v2354_v49 = vmul.f32 0.7978846, %v2350_v42 }
0x1154   :  { %v2343_v51 = vmul.f32 %v2339_v46, %v2321_v43  ;;  %v2344_v52 = vmul.f32 %v2340_v48, %v2335_v44  ;;  %3608 = vtanh.f32 %v2353_v45 }
0x1155   :  { %3610 = vtanh.f32 %v2354_v49 }
0x1156   :  { %v2347_v53 = vmul.f32 0.044715, %v2343_v51  ;;  %v2348_v54 = vmul.f32 0.044715, %v2344_v52 }
0x1158   :  { %v2351_v55 = vadd.f32 %v2347_v53, %v2321_v43  ;;  %v2352_v56 = vadd.f32 %v2348_v54, %v2335_v44  ;;  %v3548_v54 = vld [vmem:[%s4588_s21] ss:$0 sm:$0xff] }
0x115a   :  { %v2355_v58 = vmul.f32 0.7978846, %v2351_v55  ;;  %v2356_v59 = vmul.f32 0.7978846, %v2352_v56  ;;  %v3609_v47 = vpop.eup %3608 }
0x115b   :  { %v3611_v28 = vpop.eup %3610  ;;  %v2361_v60 = vadd.f32 1.0, %v3609_v47 }
0x115c   :  { %3612 = vtanh.f32 %v2355_v58  ;;  %v2362_v61 = vadd.f32 1.0, %v3611_v28 }
0x115d   :  { %3614 = vtanh.f32 %v2356_v59  ;;  %v2365_v1 = vmul.f32 0.5, %v2361_v60 }
0x115e   :  { %v2366_v2 = vmul.f32 0.5, %v2362_v61 }
0x115f   :  { %v2369_v9 = vmul.f32 %v2365_v1, %v2319_v32 }
0x1160   :  { %v2370_v50 = vmul.f32 %v2366_v2, %v2333_v33 }
0x1162   :  { %v3613_v62 = vpop.eup %3612 }
0x1163   :  { %v3615_v63 = vpop.eup %3614  ;;  %v2363_v34 = vadd.f32 1.0, %v3613_v62 }
0x1164   :  { %v2364_v3 = vadd.f32 1.0, %v3615_v63 }
0x1165   :  { %v2367_v4 = vmul.f32 0.5, %v2363_v34 }
0x1166   :  { %v2368_v7 = vmul.f32 0.5, %v2364_v3 }
0x1167   :  { %v2371_v10 = vmul.f32 %v2367_v4, %v2321_v43 }
0x1168   :  { %v2372_v11 = vmul.f32 %v2368_v7, %v2335_v44 }
0x1169   :  { %v2373_v13 = vpack.c.bf16 %v2371_v10, %v2369_v9 }
0x116a   :  { %v2374_v14 = vpack.c.bf16 %v2372_v11, %v2370_v50 }
0x116b   :  { %2517 = vmatmul.bf16.vlgmr.msra.gmra.mxu2 %v2373_v13 }
0x116c   :  { %2531 = vmatmul.bf16.vlgmr.msrb.gmra.mxu3 %v2374_v14 }
0x11ee   :  { %v2518_v15 = vpop.f32.mrf.mxu2 }
0x11ef   :  { %v2519_v16 = vadd.f32 %v3546_v57, %v2518_v15  ;;  %v2532_v17 = vpop.f32.mrf.mxu3 }
0x11f1   :  { %v2533_v19 = vadd.f32 %v2532_v17, %v2519_v16 }
0x11f3   :  { %v2542_v21 = vmul.f32 %v3547_v18, %v2533_v19 }
0x11f5   :  { %v2544_v8 = vadd.f32 %v2542_v21, %v4403_v0 }
0x11f6   :  { %v2520_v22 = vpop.f32.mrf.mxu2 }
0x11f7   :  { %v2521_v23 = vadd.f32 %v3546_v57, %v2520_v22  ;;  %v2548_v24 = vsel %vm487_vm2, %v2544_v8, 0.0  ;;  %v2534_v25 = vpop.f32.mrf.mxu3 }
0x11f8   :  { %2549 = vadd.xlane.f32.xlu2 %v2548_v24 }
0x11f9   :  { %v2535_v26 = vadd.f32 %v2534_v25, %v2521_v23 }
0x11fb   :  { %v2543_v27 = vmul.f32 %v3547_v18, %v2535_v26 }
0x11fd   :  { %v2545_v29 = vadd.f32 %v2543_v27, %v4408_v5 }
0x11ff   :  { %v2551_v30 = vsel %vm487_vm2, %v2545_v29, 0.0 }
0x1200   :  { %2552 = vadd.xlane.f32.xlu0 %v2551_v30 }
0x126b   :  { %v2550_v31 = vpop.xlane.xlu2 %2549 }
0x126c   :  { %v2554_v32 = vmul.f32 %v2550_v31, %v3896_v20 }
0x126e   :  { %v2556_v33 = vsub.f32 %v2544_v8, %v2554_v32 }
0x1270   :  { %v2558_v35 = vmul.f32 %v2556_v33, %v2556_v33 }
0x1272   :  { %v2560_v0 = vsel %vm487_vm2, %v2558_v35, 0.0 }
0x1273   :  { %v2553_v36 = vpop.xlane.xlu0 %2552  ;;  %2561 = vadd.xlane.f32.xlu1 %v2560_v0 }
0x1274   :  { %v2555_v37 = vmul.f32 %v2553_v36, %v3896_v20 }
0x1276   :  { %v2557_v38 = vsub.f32 %v2545_v29, %v2555_v37 }
0x1278   :  { %v2559_v6 = vmul.f32 %v2557_v38, %v2557_v38 }
0x127a   :  { %v2563_v39 = vsel %vm487_vm2, %v2559_v6, 0.0 }
0x127b   :  { %2564 = vadd.xlane.f32.xlu2 %v2563_v39 }
0x12e6   :  { %v2562_v5 = vpop.xlane.xlu1 %2561 }
0x12e7   :  { %v2566_v40 = vmul.f32 %v2562_v5, %v3896_v20 }
0x12e9   :  { %v2568_v12 = vadd.f32 1e-06, %v2566_v40 }
0x12eb   :  { %3616 = vrsqrt.f32 %v2568_v12  ;;  %vm2576_vm3 = vweird.f32 %v2568_v12 }
0x12ee   :  { %v2565_v41 = vpop.xlane.xlu2 %2564 }
0x12ef   :  { %v2567_v42 = vmul.f32 %v2565_v41, %v3896_v20  ;;  %v3549_v20 = vld [vmem:[%s4589_s22] ss:$0 sm:$0xff] }
0x12f1   :  { %v3617_v43 = vpop.eup %3616  ;;  %v2569_v44 = vadd.f32 1e-06, %v2567_v42 }
0x12f2   :  { %v2571_v45 = vmul.f32 %v3617_v43, %v2568_v12  ;;  %vm2577_vm1 = vweird.f32 %v3617_v43 }
0x12f3   :  { %3618 = vrsqrt.f32 %v2569_v44  ;;  %vm2578_vm4 = vmor %vm2576_vm3, %vm2577_vm1  ;;  %vm2586_vm6 = vweird.f32 %v2569_v44 }
0x12f4   :  { %v2572_v46 = vmul.f32 %v3617_v43, %v2571_v45 }
0x12f6   :  { %v2573_v48 = vmul.f32 0.5, %v2572_v46 }
0x12f8   :  { %v2574_v49 = vsub.f32 1.5, %v2573_v48 }
0x12f9   :  { %v3619_v51 = vpop.eup %3618 }
0x12fa   :  { %v2575_v52 = vmul.f32 %v3617_v43, %v2574_v49  ;;  %v2581_v53 = vmul.f32 %v3619_v51, %v2569_v44  ;;  %vm2587_vm5 = vweird.f32 %v3619_v51 }
0x12fb   :  { %vm2588_vm7 = vmor %vm2586_vm6, %vm2587_vm5 }
0x12fc   :  { %v2579_v55 = vsel %vm2578_vm4, %v3617_v43, %v2575_v52  ;;  %v2582_v56 = vmul.f32 %v3619_v51, %v2581_v53 }
0x12fd   :  { %v2590_v58 = vmul.f32 %v2579_v55, %v2556_v33 }
0x12fe   :  { %v2583_v59 = vmul.f32 0.5, %v2582_v56 }
0x12ff   :  { %v2595_v47 = vmul.f32 %v3548_v54, %v2590_v58 }
0x1300   :  { %v2584_v28 = vsub.f32 1.5, %v2583_v59 }
0x1301   :  { %v2600_v60 = vadd.f32 %v3549_v20, %v2595_v47 }
0x1302   :  { %v2585_v61 = vmul.f32 %v3619_v51, %v2584_v28 }
0x1303   :  { %v2602_v62 = vsel %vm487_vm2, %v2600_v60, 0.0 }
0x1304   :  { %2604 = vst [vmem:[%s4590_s23] sm:$0xff] %v2602_v62  ;;  %v2589_v63 = vsel %vm2588_vm7, %v3619_v51, %v2585_v61 }
0x1305   :  { %v2591_v1 = vmul.f32 %v2589_v63, %v2557_v38 }
0x1307   :  { %v2596_v34 = vmul.f32 %v3548_v54, %v2591_v1 }
0x1309   :  { %v2601_v2 = vadd.f32 %v3549_v20, %v2596_v34 }
0x130b   :  { %v2603_v3 = vsel %vm487_vm2, %v2601_v2, 0.0 }
0x130c   :  { %2605 = vst [vmem:[%s4590_s23 + $0x8] sm:$0xff] %v2603_v3 }

</bundles_post_ra>
